<compile_context>
chip_gen: v6e
topology: v6e:2x2x1
jax: 0.10.0
libtpu: 0.0.40
codegen_flags: <defaults>
</compile_context>

<pallas_src>
import functools

import jax
import jax.numpy as jnp
from jax.experimental import pallas as pl
from jax.experimental.pallas import tpu as pltpu

F = 671           # feature / width dimension
W_PAD = 768       # 6 * 128 lanes
H1 = 128          # hidden width of Linear(671, 128)
OUT = 30          # final output width
C1 = 6            # conv1 output channels
K1 = 5            # conv1 kernel width
K2 = 3            # conv2 kernel width
NEG_SLOPE = 0.01  # nn.LeakyReLU default
TILE_B_MAX = 256  # max batch tile
CHUNK_B = 8       # sublane chunk for the elementwise conv phase (fits vregs)


def _leaky(v):
    # slope < 1  =>  leaky_relu(v) == max(v, slope * v)
    return jnp.maximum(v, NEG_SLOPE * v)


def _shift(arr, d, width):
    # out[:, w] = arr[:, (w + d) % width]; combined with the zero lane tail
    # this reproduces the conv's zero padding on all valid columns.
    if d == 0:
        return arr
    return pltpu.roll(arr, shift=(-d) % width, axis=1)


def nnconv_kernel(w1_ref, b1_ref, w2_ref, b2_ref,          # SMEM scalar tables
                  x_ref, w3_ref, b3_ref, w4_ref, b4_ref,   # VMEM tensors
                  o_ref,                                    # output
                  xpad_ref, y2_ref,                         # VMEM scratch
                  *, chunk, n_chunks):
    tile_b = xpad_ref.shape[0]

    # Repack the native-width x tile into the zero-tailed 768-lane layout once
    # per tile (stays in VMEM; replaces the old HBM x_pad round trip).
    xpad_ref[:, W_PAD - 128:] = jnp.zeros((tile_b, 128), jnp.float32)
    xpad_ref[:, 0:F] = x_ref[...]

    # Column-validity mask (chunk-shaped, constant across chunks) used to make
    # the conv2 wrap-around rolls behave as zero padding.
    col = jax.lax.broadcasted_iota(jnp.int32, (chunk, W_PAD), 1)
    valid = col < F

    half1 = K1 // 2

    def conv_chunk(c, carry):
        r = pl.multiple_of(c * chunk, chunk)
        rows = pl.ds(r, chunk)
        xc = xpad_ref[rows, :]                              # (chunk, W_PAD)

        # Conv1 (1->6, k=5, pad=2) + LeakyReLU, fused into conv2's channel sum:
        #   s[k] = sum_ic w2[ic, k] * leaky(conv1_ic)     (no shifts in loop)
        x_sh = [_shift(xc, d, W_PAD) for d in range(-half1, half1 + 1)]
        s = None
        for oc in range(C1):
            acc = w1_ref[oc, 0] * x_sh[0]
            for k in range(1, K1):
                acc = acc + w1_ref[oc, k] * x_sh[k]
            y1 = _leaky(acc + b1_ref[oc])
            if s is None:
                s = [w2_ref[oc, k] * y1 for k in range(K2)]
            else:
                for k in range(K2):
                    s[k] = s[k] + w2_ref[oc, k] * y1

        # Conv2 (6->1, k=3, pad=1): shift the combined terms.  Masking the
        # lane tail BEFORE rolling makes the wrap act exactly like the conv's
        # zero padding at both edges.
        acc2 = s[1]
        acc2 = acc2 + _shift(jnp.where(valid, s[0], 0.0), -1, W_PAD)
        acc2 = acc2 + _shift(jnp.where(valid, s[2], 0.0), +1, W_PAD)
        y2_ref[rows, :] = _leaky(acc2 + b2_ref[0])
        return carry

    jax.lax.fori_loop(0, n_chunks, conv_chunk, 0)

    # Linear(671 -> 128) + LeakyReLU (zero rows of w3p kill the garbage in
    # y2's lane tail), then Linear(128 -> 30).
    y2 = y2_ref[...]
    y3 = _leaky(jnp.dot(y2, w3_ref[...], preferred_element_type=jnp.float32)
                + b3_ref[...])
    y4 = jnp.dot(y3, w4_ref[...], preferred_element_type=jnp.float32) + b4_ref[...]
    o_ref[...] = y4.astype(o_ref.dtype)


def prepare_kernel_params(params):
    """One-time prep (outside the jit'd forward): center kernel rows,
    transposes, zero-row padding of the first Linear weight."""
    w1, b1, w2, b2, w3, b3, w4, b4 = params
    w1c = w1[:, 0, K1 // 2, :]                                     # (6, 5)
    w2c = w2[0, :, K2 // 2, :]                                     # (6, 3)
    w3p = jnp.zeros((W_PAD, H1), jnp.float32).at[:F, :].set(w3.T)  # (768, 128)
    return (w1c, b1, w2c, b2,
            w3p, b3.reshape(1, H1),
            w4.T, b4.reshape(1, OUT))


def _round_up(v, m):
    return -(-v // m) * m


def _pick_tile_b(batch):
    if batch < CHUNK_B:
        return batch                       # tiny batch: single full-dim tile
    # >= 2 grid steps whenever the batch allows it (v7x has 2 TensorCores and
    # shards the "parallel" grid axis across them); capped for VMEM/overhead.
    return min(TILE_B_MAX, max(CHUNK_B, _round_up(-(-batch // 2), CHUNK_B)))


@jax.jit
def nnconv_forward(x, kparams):
    w1c, b1, w2c, b2, w3p, b3r, w4t, b4r = kparams
    x = x.astype(jnp.float32)
    B = x.shape[0]
    tile_b = _pick_tile_b(B)
    n_tiles = pl.cdiv(B, tile_b)
    chunk = min(CHUNK_B, tile_b)
    n_chunks = tile_b // chunk

    kernel = functools.partial(nnconv_kernel, chunk=chunk, n_chunks=n_chunks)
    smem = pl.BlockSpec(memory_space=pltpu.MemorySpace.SMEM)
    return pl.pallas_call(
        kernel,
        out_shape=jax.ShapeDtypeStruct((B, OUT), jnp.float32),
        grid=(n_tiles,),
        in_specs=[smem, smem, smem, smem,
                  pl.BlockSpec((tile_b, F), lambda i: (i, 0)),     # x: pipelined, native width
                  pl.BlockSpec((W_PAD, H1), lambda i: (0, 0)),     # w3: resident
                  pl.BlockSpec((1, H1), lambda i: (0, 0)),         # b3: resident
                  pl.BlockSpec((H1, OUT), lambda i: (0, 0)),       # w4: resident
                  pl.BlockSpec((1, OUT), lambda i: (0, 0))],       # b4: resident
        out_specs=pl.BlockSpec((tile_b, OUT), lambda i: (i, 0)),
        scratch_shapes=[pltpu.VMEM((tile_b, W_PAD), jnp.float32),  # zero-tailed x
                        pltpu.VMEM((tile_b, W_PAD), jnp.float32)], # y2
        compiler_params=pltpu.CompilerParams(
            dimension_semantics=("parallel",)),
    )(w1c, b1, w2c, b2, x, w3p, b3r, w4t, b4r)


def init_params(key):
    # Deterministic synthetic params (PyTorch-like uniform(-1/sqrt(fan_in), ..)).
    ks = jax.random.split(key, 8)

    def u(k, shape, fan_in):
        bound = 1.0 / float(fan_in) ** 0.5
        return jax.random.uniform(k, shape, jnp.float32, -bound, bound)

    w1 = u(ks[0], (C1, 1, K1, K1), 1 * K1 * K1)   # Conv2d(1, 6, 5)
    b1 = u(ks[1], (C1,), 1 * K1 * K1)
    w2 = u(ks[2], (1, C1, K2, K2), C1 * K2 * K2)  # Conv2d(6, 1, 3)
    b2 = u(ks[3], (1,), C1 * K2 * K2)
    w3 = u(ks[4], (H1, F), F)                     # Linear(671, 128), (out, in)
    b3 = u(ks[5], (H1,), F)
    w4 = u(ks[6], (OUT, H1), H1)                  # Linear(128, 30)
    b4 = u(ks[7], (OUT,), H1)
    return w1, b1, w2, b2, w3, b3, w4, b4


def reference(x, params):
    # Pure-JAX reference with the full 2-D convolutions (exact module semantics).
    w1, b1, w2, b2, w3, b3, w4, b4 = params
    xi = x.reshape(x.shape[0], 1, 1, F)
    dn = ("NCHW", "OIHW", "NCHW")

    def lrelu(v):
        return jnp.where(v >= 0, v, NEG_SLOPE * v)

    y = jax.lax.conv_general_dilated(xi, w1, (1, 1), [(2, 2), (2, 2)],
                                     dimension_numbers=dn)
    y = lrelu(y + b1.reshape(1, C1, 1, 1))
    y = jax.lax.conv_general_dilated(y, w2, (1, 1), [(1, 1), (1, 1)],
                                     dimension_numbers=dn)
    y = lrelu(y + b2.reshape(1, 1, 1, 1))
    y = y.reshape(x.shape[0], F)
    y = lrelu(y @ w3.T + b3)
    return y @ w4.T + b4


if __name__ == "__main__":
    key = jax.random.PRNGKey(0)
    kx, kp = jax.random.split(key)
    params = init_params(kp)
    kparams = prepare_kernel_params(params)

    # B=2 exercises the tiny single-chunk tile; B=50 exercises the chunked
    # conv loop, a 2-step grid and a partial edge tile.
    for B in (2, 50):
        x = jax.random.normal(jax.random.fold_in(kx, B), (B, F), jnp.float32)
        out = nnconv_forward(x, kparams)
        jax.block_until_ready(out)
        assert out.shape == (B, OUT)

        ref = reference(x, params)
        err = float(jnp.max(jnp.abs(out - ref)))
        if not err < 1e-3:
            raise SystemExit(f"B={B}: mismatch vs reference, max abs err = {err}")
    print("KERNEL_OK")
</pallas_src>

<mosaic_0001>
module attributes {stable_mosaic.version = 11 : i64} {
  func.func @nnconv_kernel(%arg0: i32, %arg1: memref<6x5xf32, #tpu.memory_space<smem>>, %arg2: memref<6xf32, #tpu.memory_space<smem>>, %arg3: memref<6x3xf32, #tpu.memory_space<smem>>, %arg4: memref<1xf32, #tpu.memory_space<smem>>, %arg5: memref<2x671xf32, #tpu.memory_space<vmem>>, %arg6: memref<768x128xf32, #tpu.memory_space<vmem>>, %arg7: memref<1x128xf32, #tpu.memory_space<vmem>>, %arg8: memref<128x30xf32, #tpu.memory_space<vmem>>, %arg9: memref<1x30xf32, #tpu.memory_space<vmem>>, %arg10: memref<2x30xf32, #tpu.memory_space<vmem>>, %arg11: memref<2x768xf32, #tpu.memory_space<vmem>>, %arg12: memref<2x768xf32, #tpu.memory_space<vmem>>) attributes {dimension_semantics = [#tpu.dimension_semantics<parallel>], iteration_bounds = array<i64: 1>, scalar_prefetch = 0 : i64, scratch_operands = 2 : i64, tpu.core_type = #tpu.core_type<tc>, window_params = [{transform_indices = @transform_0, window_bounds = array<i64: 6, 5>}, {transform_indices = @transform_1, window_bounds = array<i64: 6>}, {transform_indices = @transform_2, window_bounds = array<i64: 6, 3>}, {transform_indices = @transform_3, window_bounds = array<i64: 1>}, {transform_indices = @transform_4, window_bounds = array<i64: 2, 671>}, {pipeline_mode = #tpu.pipeline_mode<synchronous>, transform_indices = @transform_5, window_bounds = array<i64: 768, 128>}, {pipeline_mode = #tpu.pipeline_mode<synchronous>, transform_indices = @transform_6, window_bounds = array<i64: 1, 128>}, {pipeline_mode = #tpu.pipeline_mode<synchronous>, transform_indices = @transform_7, window_bounds = array<i64: 128, 30>}, {pipeline_mode = #tpu.pipeline_mode<synchronous>, transform_indices = @transform_8, window_bounds = array<i64: 1, 30>}, {transform_indices = @transform_9, window_bounds = array<i64: 2, 30>}]} {
    %cst = arith.constant 0.000000e+00 : f32
    %0 = vector.broadcast %cst : f32 to vector<2x128xf32>
    %c0 = arith.constant 0 : index
    %c640 = arith.constant 640 : index
    %1 = vector.load %arg11[%c0, %c640] : memref<2x768xf32, #tpu.memory_space<vmem>>, vector<2x128xf32>
    tpu.vector_store %arg11[%c0, %c640], %0 {strides = array<i32>} : memref<2x768xf32, #tpu.memory_space<vmem>>, vector<2x128xf32>,
    %c0_0 = arith.constant 0 : index
    %c0_1 = arith.constant 0 : index
    %2 = vector.load %arg5[%c0_0, %c0_1] : memref<2x671xf32, #tpu.memory_space<vmem>>, vector<2x671xf32>
    %c0_2 = arith.constant 0 : index
    %c0_3 = arith.constant 0 : index
    %3 = vector.load %arg11[%c0_2, %c0_3] : memref<2x768xf32, #tpu.memory_space<vmem>>, vector<2x671xf32>
    tpu.vector_store %arg11[%c0_2, %c0_3], %2 {strides = array<i32>} : memref<2x768xf32, #tpu.memory_space<vmem>>, vector<2x671xf32>,
    %4 = tpu.iota {dimensions = array<i32: 1>} : vector<2x768xi32>
    %c671_i32 = arith.constant 671 : i32
    %5 = vector.broadcast %c671_i32 : i32 to vector<2x768xi32>
    %6 = arith.cmpi slt, %4, %5 : vector<2x768xi32>
    %c0_i32 = arith.constant 0 : i32
    %c2_i32 = arith.constant 2 : i32
    %7 = arith.muli %c0_i32, %c2_i32 : i32
    %8 = tpu.assume_multiple %7, 2 : i32
    %9 = arith.index_cast %8 : i32 to index
    %c0_4 = arith.constant 0 : index
    %10 = vector.load %arg11[%9, %c0_4] : memref<2x768xf32, #tpu.memory_space<vmem>>, vector<2x768xf32>
    %c2_i32_5 = arith.constant 2 : i32
    %11 = tpu.dynamic_rotate %10 by %c2_i32_5 dim 1 : vector<2x768xf32>, i32 -> vector<2x768xf32>
    %c1_i32 = arith.constant 1 : i32
    %12 = tpu.dynamic_rotate %10 by %c1_i32 dim 1 : vector<2x768xf32>, i32 -> vector<2x768xf32>
    %c767_i32 = arith.constant 767 : i32
    %13 = tpu.dynamic_rotate %10 by %c767_i32 dim 1 : vector<2x768xf32>, i32 -> vector<2x768xf32>
    %c766_i32 = arith.constant 766 : i32
    %14 = tpu.dynamic_rotate %10 by %c766_i32 dim 1 : vector<2x768xf32>, i32 -> vector<2x768xf32>
    %c0_6 = arith.constant 0 : index
    %c0_7 = arith.constant 0 : index
    %15 = memref.load %arg1[%c0_6, %c0_7] : memref<6x5xf32, #tpu.memory_space<smem>>
    %16 = vector.broadcast %15 : f32 to vector<2x768xf32>
    %17 = arith.mulf %16, %11 : vector<2x768xf32>
    %c0_8 = arith.constant 0 : index
    %c1 = arith.constant 1 : index
    %18 = memref.load %arg1[%c0_8, %c1] : memref<6x5xf32, #tpu.memory_space<smem>>
    %19 = vector.broadcast %18 : f32 to vector<2x768xf32>
    %20 = arith.mulf %19, %12 : vector<2x768xf32>
    %21 = arith.addf %17, %20 : vector<2x768xf32>
    %c0_9 = arith.constant 0 : index
    %c2 = arith.constant 2 : index
    %22 = memref.load %arg1[%c0_9, %c2] : memref<6x5xf32, #tpu.memory_space<smem>>
    %23 = vector.broadcast %22 : f32 to vector<2x768xf32>
    %24 = arith.mulf %23, %10 : vector<2x768xf32>
    %25 = arith.addf %21, %24 : vector<2x768xf32>
    %c0_10 = arith.constant 0 : index
    %c3 = arith.constant 3 : index
    %26 = memref.load %arg1[%c0_10, %c3] : memref<6x5xf32, #tpu.memory_space<smem>>
    %27 = vector.broadcast %26 : f32 to vector<2x768xf32>
    %28 = arith.mulf %27, %13 : vector<2x768xf32>
    %29 = arith.addf %25, %28 : vector<2x768xf32>
    %c0_11 = arith.constant 0 : index
    %c4 = arith.constant 4 : index
    %30 = memref.load %arg1[%c0_11, %c4] : memref<6x5xf32, #tpu.memory_space<smem>>
    %31 = vector.broadcast %30 : f32 to vector<2x768xf32>
    %32 = arith.mulf %31, %14 : vector<2x768xf32>
    %33 = arith.addf %29, %32 : vector<2x768xf32>
    %c0_12 = arith.constant 0 : index
    %34 = memref.load %arg2[%c0_12] : memref<6xf32, #tpu.memory_space<smem>>
    %35 = vector.broadcast %34 : f32 to vector<2x768xf32>
    %36 = arith.addf %33, %35 : vector<2x768xf32>
    %cst_13 = arith.constant 0.00999999977 : f32
    %37 = vector.broadcast %cst_13 : f32 to vector<2x768xf32>
    %38 = arith.mulf %37, %36 : vector<2x768xf32>
    %39 = arith.maximumf %36, %38 : vector<2x768xf32>
    %c0_14 = arith.constant 0 : index
    %c0_15 = arith.constant 0 : index
    %40 = memref.load %arg3[%c0_14, %c0_15] : memref<6x3xf32, #tpu.memory_space<smem>>
    %41 = vector.broadcast %40 : f32 to vector<2x768xf32>
    %42 = arith.mulf %41, %39 : vector<2x768xf32>
    %c0_16 = arith.constant 0 : index
    %c1_17 = arith.constant 1 : index
    %43 = memref.load %arg3[%c0_16, %c1_17] : memref<6x3xf32, #tpu.memory_space<smem>>
    %44 = vector.broadcast %43 : f32 to vector<2x768xf32>
    %45 = arith.mulf %44, %39 : vector<2x768xf32>
    %c0_18 = arith.constant 0 : index
    %c2_19 = arith.constant 2 : index
    %46 = memref.load %arg3[%c0_18, %c2_19] : memref<6x3xf32, #tpu.memory_space<smem>>
    %47 = vector.broadcast %46 : f32 to vector<2x768xf32>
    %48 = arith.mulf %47, %39 : vector<2x768xf32>
    %c1_20 = arith.constant 1 : index
    %c0_21 = arith.constant 0 : index
    %49 = memref.load %arg1[%c1_20, %c0_21] : memref<6x5xf32, #tpu.memory_space<smem>>
    %50 = vector.broadcast %49 : f32 to vector<2x768xf32>
    %51 = arith.mulf %50, %11 : vector<2x768xf32>
    %c1_22 = arith.constant 1 : index
    %c1_23 = arith.constant 1 : index
    %52 = memref.load %arg1[%c1_22, %c1_23] : memref<6x5xf32, #tpu.memory_space<smem>>
    %53 = vector.broadcast %52 : f32 to vector<2x768xf32>
    %54 = arith.mulf %53, %12 : vector<2x768xf32>
    %55 = arith.addf %51, %54 : vector<2x768xf32>
    %c1_24 = arith.constant 1 : index
    %c2_25 = arith.constant 2 : index
    %56 = memref.load %arg1[%c1_24, %c2_25] : memref<6x5xf32, #tpu.memory_space<smem>>
    %57 = vector.broadcast %56 : f32 to vector<2x768xf32>
    %58 = arith.mulf %57, %10 : vector<2x768xf32>
    %59 = arith.addf %55, %58 : vector<2x768xf32>
    %c1_26 = arith.constant 1 : index
    %c3_27 = arith.constant 3 : index
    %60 = memref.load %arg1[%c1_26, %c3_27] : memref<6x5xf32, #tpu.memory_space<smem>>
    %61 = vector.broadcast %60 : f32 to vector<2x768xf32>
    %62 = arith.mulf %61, %13 : vector<2x768xf32>
    %63 = arith.addf %59, %62 : vector<2x768xf32>
    %c1_28 = arith.constant 1 : index
    %c4_29 = arith.constant 4 : index
    %64 = memref.load %arg1[%c1_28, %c4_29] : memref<6x5xf32, #tpu.memory_space<smem>>
    %65 = vector.broadcast %64 : f32 to vector<2x768xf32>
    %66 = arith.mulf %65, %14 : vector<2x768xf32>
    %67 = arith.addf %63, %66 : vector<2x768xf32>
    %c1_30 = arith.constant 1 : index
    %68 = memref.load %arg2[%c1_30] : memref<6xf32, #tpu.memory_space<smem>>
    %69 = vector.broadcast %68 : f32 to vector<2x768xf32>
    %70 = arith.addf %67, %69 : vector<2x768xf32>
    %cst_31 = arith.constant 0.00999999977 : f32
    %71 = vector.broadcast %cst_31 : f32 to vector<2x768xf32>
    %72 = arith.mulf %71, %70 : vector<2x768xf32>
    %73 = arith.maximumf %70, %72 : vector<2x768xf32>
    %c1_32 = arith.constant 1 : index
    %c0_33 = arith.constant 0 : index
    %74 = memref.load %arg3[%c1_32, %c0_33] : memref<6x3xf32, #tpu.memory_space<smem>>
    %75 = vector.broadcast %74 : f32 to vector<2x768xf32>
    %76 = arith.mulf %75, %73 : vector<2x768xf32>
    %77 = arith.addf %42, %76 : vector<2x768xf32>
    %c1_34 = arith.constant 1 : index
    %c1_35 = arith.constant 1 : index
    %78 = memref.load %arg3[%c1_34, %c1_35] : memref<6x3xf32, #tpu.memory_space<smem>>
    %79 = vector.broadcast %78 : f32 to vector<2x768xf32>
    %80 = arith.mulf %79, %73 : vector<2x768xf32>
    %81 = arith.addf %45, %80 : vector<2x768xf32>
    %c1_36 = arith.constant 1 : index
    %c2_37 = arith.constant 2 : index
    %82 = memref.load %arg3[%c1_36, %c2_37] : memref<6x3xf32, #tpu.memory_space<smem>>
    %83 = vector.broadcast %82 : f32 to vector<2x768xf32>
    %84 = arith.mulf %83, %73 : vector<2x768xf32>
    %85 = arith.addf %48, %84 : vector<2x768xf32>
    %c2_38 = arith.constant 2 : index
    %c0_39 = arith.constant 0 : index
    %86 = memref.load %arg1[%c2_38, %c0_39] : memref<6x5xf32, #tpu.memory_space<smem>>
    %87 = vector.broadcast %86 : f32 to vector<2x768xf32>
    %88 = arith.mulf %87, %11 : vector<2x768xf32>
    %c2_40 = arith.constant 2 : index
    %c1_41 = arith.constant 1 : index
    %89 = memref.load %arg1[%c2_40, %c1_41] : memref<6x5xf32, #tpu.memory_space<smem>>
    %90 = vector.broadcast %89 : f32 to vector<2x768xf32>
    %91 = arith.mulf %90, %12 : vector<2x768xf32>
    %92 = arith.addf %88, %91 : vector<2x768xf32>
    %c2_42 = arith.constant 2 : index
    %c2_43 = arith.constant 2 : index
    %93 = memref.load %arg1[%c2_42, %c2_43] : memref<6x5xf32, #tpu.memory_space<smem>>
    %94 = vector.broadcast %93 : f32 to vector<2x768xf32>
    %95 = arith.mulf %94, %10 : vector<2x768xf32>
    %96 = arith.addf %92, %95 : vector<2x768xf32>
    %c2_44 = arith.constant 2 : index
    %c3_45 = arith.constant 3 : index
    %97 = memref.load %arg1[%c2_44, %c3_45] : memref<6x5xf32, #tpu.memory_space<smem>>
    %98 = vector.broadcast %97 : f32 to vector<2x768xf32>
    %99 = arith.mulf %98, %13 : vector<2x768xf32>
    %100 = arith.addf %96, %99 : vector<2x768xf32>
    %c2_46 = arith.constant 2 : index
    %c4_47 = arith.constant 4 : index
    %101 = memref.load %arg1[%c2_46, %c4_47] : memref<6x5xf32, #tpu.memory_space<smem>>
    %102 = vector.broadcast %101 : f32 to vector<2x768xf32>
    %103 = arith.mulf %102, %14 : vector<2x768xf32>
    %104 = arith.addf %100, %103 : vector<2x768xf32>
    %c2_48 = arith.constant 2 : index
    %105 = memref.load %arg2[%c2_48] : memref<6xf32, #tpu.memory_space<smem>>
    %106 = vector.broadcast %105 : f32 to vector<2x768xf32>
    %107 = arith.addf %104, %106 : vector<2x768xf32>
    %cst_49 = arith.constant 0.00999999977 : f32
    %108 = vector.broadcast %cst_49 : f32 to vector<2x768xf32>
    %109 = arith.mulf %108, %107 : vector<2x768xf32>
    %110 = arith.maximumf %107, %109 : vector<2x768xf32>
    %c2_50 = arith.constant 2 : index
    %c0_51 = arith.constant 0 : index
    %111 = memref.load %arg3[%c2_50, %c0_51] : memref<6x3xf32, #tpu.memory_space<smem>>
    %112 = vector.broadcast %111 : f32 to vector<2x768xf32>
    %113 = arith.mulf %112, %110 : vector<2x768xf32>
    %114 = arith.addf %77, %113 : vector<2x768xf32>
    %c2_52 = arith.constant 2 : index
    %c1_53 = arith.constant 1 : index
    %115 = memref.load %arg3[%c2_52, %c1_53] : memref<6x3xf32, #tpu.memory_space<smem>>
    %116 = vector.broadcast %115 : f32 to vector<2x768xf32>
    %117 = arith.mulf %116, %110 : vector<2x768xf32>
    %118 = arith.addf %81, %117 : vector<2x768xf32>
    %c2_54 = arith.constant 2 : index
    %c2_55 = arith.constant 2 : index
    %119 = memref.load %arg3[%c2_54, %c2_55] : memref<6x3xf32, #tpu.memory_space<smem>>
    %120 = vector.broadcast %119 : f32 to vector<2x768xf32>
    %121 = arith.mulf %120, %110 : vector<2x768xf32>
    %122 = arith.addf %85, %121 : vector<2x768xf32>
    %c3_56 = arith.constant 3 : index
    %c0_57 = arith.constant 0 : index
    %123 = memref.load %arg1[%c3_56, %c0_57] : memref<6x5xf32, #tpu.memory_space<smem>>
    %124 = vector.broadcast %123 : f32 to vector<2x768xf32>
    %125 = arith.mulf %124, %11 : vector<2x768xf32>
    %c3_58 = arith.constant 3 : index
    %c1_59 = arith.constant 1 : index
    %126 = memref.load %arg1[%c3_58, %c1_59] : memref<6x5xf32, #tpu.memory_space<smem>>
    %127 = vector.broadcast %126 : f32 to vector<2x768xf32>
    %128 = arith.mulf %127, %12 : vector<2x768xf32>
    %129 = arith.addf %125, %128 : vector<2x768xf32>
    %c3_60 = arith.constant 3 : index
    %c2_61 = arith.constant 2 : index
    %130 = memref.load %arg1[%c3_60, %c2_61] : memref<6x5xf32, #tpu.memory_space<smem>>
    %131 = vector.broadcast %130 : f32 to vector<2x768xf32>
    %132 = arith.mulf %131, %10 : vector<2x768xf32>
    %133 = arith.addf %129, %132 : vector<2x768xf32>
    %c3_62 = arith.constant 3 : index
    %c3_63 = arith.constant 3 : index
    %134 = memref.load %arg1[%c3_62, %c3_63] : memref<6x5xf32, #tpu.memory_space<smem>>
    %135 = vector.broadcast %134 : f32 to vector<2x768xf32>
    %136 = arith.mulf %135, %13 : vector<2x768xf32>
    %137 = arith.addf %133, %136 : vector<2x768xf32>
    %c3_64 = arith.constant 3 : index
    %c4_65 = arith.constant 4 : index
    %138 = memref.load %arg1[%c3_64, %c4_65] : memref<6x5xf32, #tpu.memory_space<smem>>
    %139 = vector.broadcast %138 : f32 to vector<2x768xf32>
    %140 = arith.mulf %139, %14 : vector<2x768xf32>
    %141 = arith.addf %137, %140 : vector<2x768xf32>
    %c3_66 = arith.constant 3 : index
    %142 = memref.load %arg2[%c3_66] : memref<6xf32, #tpu.memory_space<smem>>
    %143 = vector.broadcast %142 : f32 to vector<2x768xf32>
    %144 = arith.addf %141, %143 : vector<2x768xf32>
    %cst_67 = arith.constant 0.00999999977 : f32
    %145 = vector.broadcast %cst_67 : f32 to vector<2x768xf32>
    %146 = arith.mulf %145, %144 : vector<2x768xf32>
    %147 = arith.maximumf %144, %146 : vector<2x768xf32>
    %c3_68 = arith.constant 3 : index
    %c0_69 = arith.constant 0 : index
    %148 = memref.load %arg3[%c3_68, %c0_69] : memref<6x3xf32, #tpu.memory_space<smem>>
    %149 = vector.broadcast %148 : f32 to vector<2x768xf32>
    %150 = arith.mulf %149, %147 : vector<2x768xf32>
    %151 = arith.addf %114, %150 : vector<2x768xf32>
    %c3_70 = arith.constant 3 : index
    %c1_71 = arith.constant 1 : index
    %152 = memref.load %arg3[%c3_70, %c1_71] : memref<6x3xf32, #tpu.memory_space<smem>>
    %153 = vector.broadcast %152 : f32 to vector<2x768xf32>
    %154 = arith.mulf %153, %147 : vector<2x768xf32>
    %155 = arith.addf %118, %154 : vector<2x768xf32>
    %c3_72 = arith.constant 3 : index
    %c2_73 = arith.constant 2 : index
    %156 = memref.load %arg3[%c3_72, %c2_73] : memref<6x3xf32, #tpu.memory_space<smem>>
    %157 = vector.broadcast %156 : f32 to vector<2x768xf32>
    %158 = arith.mulf %157, %147 : vector<2x768xf32>
    %159 = arith.addf %122, %158 : vector<2x768xf32>
    %c4_74 = arith.constant 4 : index
    %c0_75 = arith.constant 0 : index
    %160 = memref.load %arg1[%c4_74, %c0_75] : memref<6x5xf32, #tpu.memory_space<smem>>
    %161 = vector.broadcast %160 : f32 to vector<2x768xf32>
    %162 = arith.mulf %161, %11 : vector<2x768xf32>
    %c4_76 = arith.constant 4 : index
    %c1_77 = arith.constant 1 : index
    %163 = memref.load %arg1[%c4_76, %c1_77] : memref<6x5xf32, #tpu.memory_space<smem>>
    %164 = vector.broadcast %163 : f32 to vector<2x768xf32>
    %165 = arith.mulf %164, %12 : vector<2x768xf32>
    %166 = arith.addf %162, %165 : vector<2x768xf32>
    %c4_78 = arith.constant 4 : index
    %c2_79 = arith.constant 2 : index
    %167 = memref.load %arg1[%c4_78, %c2_79] : memref<6x5xf32, #tpu.memory_space<smem>>
    %168 = vector.broadcast %167 : f32 to vector<2x768xf32>
    %169 = arith.mulf %168, %10 : vector<2x768xf32>
    %170 = arith.addf %166, %169 : vector<2x768xf32>
    %c4_80 = arith.constant 4 : index
    %c3_81 = arith.constant 3 : index
    %171 = memref.load %arg1[%c4_80, %c3_81] : memref<6x5xf32, #tpu.memory_space<smem>>
    %172 = vector.broadcast %171 : f32 to vector<2x768xf32>
    %173 = arith.mulf %172, %13 : vector<2x768xf32>
    %174 = arith.addf %170, %173 : vector<2x768xf32>
    %c4_82 = arith.constant 4 : index
    %c4_83 = arith.constant 4 : index
    %175 = memref.load %arg1[%c4_82, %c4_83] : memref<6x5xf32, #tpu.memory_space<smem>>
    %176 = vector.broadcast %175 : f32 to vector<2x768xf32>
    %177 = arith.mulf %176, %14 : vector<2x768xf32>
    %178 = arith.addf %174, %177 : vector<2x768xf32>
    %c4_84 = arith.constant 4 : index
    %179 = memref.load %arg2[%c4_84] : memref<6xf32, #tpu.memory_space<smem>>
    %180 = vector.broadcast %179 : f32 to vector<2x768xf32>
    %181 = arith.addf %178, %180 : vector<2x768xf32>
    %cst_85 = arith.constant 0.00999999977 : f32
    %182 = vector.broadcast %cst_85 : f32 to vector<2x768xf32>
    %183 = arith.mulf %182, %181 : vector<2x768xf32>
    %184 = arith.maximumf %181, %183 : vector<2x768xf32>
    %c4_86 = arith.constant 4 : index
    %c0_87 = arith.constant 0 : index
    %185 = memref.load %arg3[%c4_86, %c0_87] : memref<6x3xf32, #tpu.memory_space<smem>>
    %186 = vector.broadcast %185 : f32 to vector<2x768xf32>
    %187 = arith.mulf %186, %184 : vector<2x768xf32>
    %188 = arith.addf %151, %187 : vector<2x768xf32>
    %c4_88 = arith.constant 4 : index
    %c1_89 = arith.constant 1 : index
    %189 = memref.load %arg3[%c4_88, %c1_89] : memref<6x3xf32, #tpu.memory_space<smem>>
    %190 = vector.broadcast %189 : f32 to vector<2x768xf32>
    %191 = arith.mulf %190, %184 : vector<2x768xf32>
    %192 = arith.addf %155, %191 : vector<2x768xf32>
    %c4_90 = arith.constant 4 : index
    %c2_91 = arith.constant 2 : index
    %193 = memref.load %arg3[%c4_90, %c2_91] : memref<6x3xf32, #tpu.memory_space<smem>>
    %194 = vector.broadcast %193 : f32 to vector<2x768xf32>
    %195 = arith.mulf %194, %184 : vector<2x768xf32>
    %196 = arith.addf %159, %195 : vector<2x768xf32>
    %c5 = arith.constant 5 : index
    %c0_92 = arith.constant 0 : index
    %197 = memref.load %arg1[%c5, %c0_92] : memref<6x5xf32, #tpu.memory_space<smem>>
    %198 = vector.broadcast %197 : f32 to vector<2x768xf32>
    %199 = arith.mulf %198, %11 : vector<2x768xf32>
    %c5_93 = arith.constant 5 : index
    %c1_94 = arith.constant 1 : index
    %200 = memref.load %arg1[%c5_93, %c1_94] : memref<6x5xf32, #tpu.memory_space<smem>>
    %201 = vector.broadcast %200 : f32 to vector<2x768xf32>
    %202 = arith.mulf %201, %12 : vector<2x768xf32>
    %203 = arith.addf %199, %202 : vector<2x768xf32>
    %c5_95 = arith.constant 5 : index
    %c2_96 = arith.constant 2 : index
    %204 = memref.load %arg1[%c5_95, %c2_96] : memref<6x5xf32, #tpu.memory_space<smem>>
    %205 = vector.broadcast %204 : f32 to vector<2x768xf32>
    %206 = arith.mulf %205, %10 : vector<2x768xf32>
    %207 = arith.addf %203, %206 : vector<2x768xf32>
    %c5_97 = arith.constant 5 : index
    %c3_98 = arith.constant 3 : index
    %208 = memref.load %arg1[%c5_97, %c3_98] : memref<6x5xf32, #tpu.memory_space<smem>>
    %209 = vector.broadcast %208 : f32 to vector<2x768xf32>
    %210 = arith.mulf %209, %13 : vector<2x768xf32>
    %211 = arith.addf %207, %210 : vector<2x768xf32>
    %c5_99 = arith.constant 5 : index
    %c4_100 = arith.constant 4 : index
    %212 = memref.load %arg1[%c5_99, %c4_100] : memref<6x5xf32, #tpu.memory_space<smem>>
    %213 = vector.broadcast %212 : f32 to vector<2x768xf32>
    %214 = arith.mulf %213, %14 : vector<2x768xf32>
    %215 = arith.addf %211, %214 : vector<2x768xf32>
    %c5_101 = arith.constant 5 : index
    %216 = memref.load %arg2[%c5_101] : memref<6xf32, #tpu.memory_space<smem>>
    %217 = vector.broadcast %216 : f32 to vector<2x768xf32>
    %218 = arith.addf %215, %217 : vector<2x768xf32>
    %cst_102 = arith.constant 0.00999999977 : f32
    %219 = vector.broadcast %cst_102 : f32 to vector<2x768xf32>
    %220 = arith.mulf %219, %218 : vector<2x768xf32>
    %221 = arith.maximumf %218, %220 : vector<2x768xf32>
    %c5_103 = arith.constant 5 : index
    %c0_104 = arith.constant 0 : index
    %222 = memref.load %arg3[%c5_103, %c0_104] : memref<6x3xf32, #tpu.memory_space<smem>>
    %223 = vector.broadcast %222 : f32 to vector<2x768xf32>
    %224 = arith.mulf %223, %221 : vector<2x768xf32>
    %225 = arith.addf %188, %224 : vector<2x768xf32>
    %c5_105 = arith.constant 5 : index
    %c1_106 = arith.constant 1 : index
    %226 = memref.load %arg3[%c5_105, %c1_106] : memref<6x3xf32, #tpu.memory_space<smem>>
    %227 = vector.broadcast %226 : f32 to vector<2x768xf32>
    %228 = arith.mulf %227, %221 : vector<2x768xf32>
    %229 = arith.addf %192, %228 : vector<2x768xf32>
    %c5_107 = arith.constant 5 : index
    %c2_108 = arith.constant 2 : index
    %230 = memref.load %arg3[%c5_107, %c2_108] : memref<6x3xf32, #tpu.memory_space<smem>>
    %231 = vector.broadcast %230 : f32 to vector<2x768xf32>
    %232 = arith.mulf %231, %221 : vector<2x768xf32>
    %233 = arith.addf %196, %232 : vector<2x768xf32>
    %cst_109 = arith.constant 0.000000e+00 : f32
    %234 = vector.broadcast %cst_109 : f32 to vector<2x768xf32>
    %235 = arith.select %6, %225, %234 : vector<2x768xi1>, vector<2x768xf32>
    %c1_i32_110 = arith.constant 1 : i32
    %236 = tpu.dynamic_rotate %235 by %c1_i32_110 dim 1 : vector<2x768xf32>, i32 -> vector<2x768xf32>
    %237 = arith.addf %229, %236 : vector<2x768xf32>
    %cst_111 = arith.constant 0.000000e+00 : f32
    %238 = vector.broadcast %cst_111 : f32 to vector<2x768xf32>
    %239 = arith.select %6, %233, %238 : vector<2x768xi1>, vector<2x768xf32>
    %c767_i32_112 = arith.constant 767 : i32
    %240 = tpu.dynamic_rotate %239 by %c767_i32_112 dim 1 : vector<2x768xf32>, i32 -> vector<2x768xf32>
    %241 = arith.addf %237, %240 : vector<2x768xf32>
    %c0_113 = arith.constant 0 : index
    %242 = memref.load %arg4[%c0_113] : memref<1xf32, #tpu.memory_space<smem>>
    %243 = vector.broadcast %242 : f32 to vector<2x768xf32>
    %244 = arith.addf %241, %243 : vector<2x768xf32>
    %cst_114 = arith.constant 0.00999999977 : f32
    %245 = vector.broadcast %cst_114 : f32 to vector<2x768xf32>
    %246 = arith.mulf %245, %244 : vector<2x768xf32>
    %247 = arith.maximumf %244, %246 : vector<2x768xf32>
    %248 = arith.index_cast %8 : i32 to index
    %c0_115 = arith.constant 0 : index
    %249 = vector.load %arg12[%248, %c0_115] : memref<2x768xf32, #tpu.memory_space<vmem>>, vector<2x768xf32>
    tpu.vector_store %arg12[%248, %c0_115], %247 {strides = array<i32>} : memref<2x768xf32, #tpu.memory_space<vmem>>, vector<2x768xf32>,
    %c1_i32_116 = arith.constant 1 : i32
    %c0_117 = arith.constant 0 : index
    %c0_118 = arith.constant 0 : index
    %250 = vector.load %arg12[%c0_117, %c0_118] : memref<2x768xf32, #tpu.memory_space<vmem>>, vector<2x768xf32>
    %c0_119 = arith.constant 0 : index
    %c0_120 = arith.constant 0 : index
    %251 = vector.load %arg6[%c0_119, %c0_120] : memref<768x128xf32, #tpu.memory_space<vmem>>, vector<768x128xf32>
    %cst_121 = arith.constant dense<0.000000e+00> : vector<2x128xf32>
    %252 = tpu.matmul %250, %251, %cst_121 {dimension_numbers = #tpu.dot_dimension_numbers<[1], [0], [0], [1], [0, 0, 1, 1], [], []>} : vector<2x768xf32>, vector<768x128xf32>, vector<2x128xf32> -> vector<2x128xf32>
    %c0_122 = arith.constant 0 : index
    %c0_123 = arith.constant 0 : index
    %253 = vector.load %arg7[%c0_122, %c0_123] : memref<1x128xf32, #tpu.memory_space<vmem>>, vector<1x128xf32>
    %254 = vector.broadcast %253 : vector<1x128xf32> to vector<2x128xf32>
    %255 = arith.addf %252, %254 : vector<2x128xf32>
    %cst_124 = arith.constant 0.00999999977 : f32
    %256 = vector.broadcast %cst_124 : f32 to vector<2x128xf32>
    %257 = arith.mulf %256, %255 : vector<2x128xf32>
    %258 = arith.maximumf %255, %257 : vector<2x128xf32>
    %c0_125 = arith.constant 0 : index
    %c0_126 = arith.constant 0 : index
    %259 = vector.load %arg8[%c0_125, %c0_126] : memref<128x30xf32, #tpu.memory_space<vmem>>, vector<128x30xf32>
    %cst_127 = arith.constant dense<0.000000e+00> : vector<2x30xf32>
    %260 = tpu.matmul %258, %259, %cst_127 {dimension_numbers = #tpu.dot_dimension_numbers<[1], [0], [0], [1], [0, 0, 1, 1], [], []>} : vector<2x128xf32>, vector<128x30xf32>, vector<2x30xf32> -> vector<2x30xf32>
    %c0_128 = arith.constant 0 : index
    %c0_129 = arith.constant 0 : index
    %261 = vector.load %arg9[%c0_128, %c0_129] : memref<1x30xf32, #tpu.memory_space<vmem>>, vector<1x30xf32>
    %262 = vector.broadcast %261 : vector<1x30xf32> to vector<2x30xf32>
    %263 = arith.addf %260, %262 : vector<2x30xf32>
    %c0_130 = arith.constant 0 : index
    %c0_131 = arith.constant 0 : index
    %264 = vector.load %arg10[%c0_130, %c0_131] : memref<2x30xf32, #tpu.memory_space<vmem>>, vector<2x30xf32>
    tpu.vector_store %arg10[%c0_130, %c0_131], %263 {strides = array<i32>} : memref<2x30xf32, #tpu.memory_space<vmem>>, vector<2x30xf32>,
    return
  }
  func.func @transform_0(%arg0: i32) -> (i32, i32) {
    %c0_i32 = arith.constant 0 : i32
    %c0_i32_0 = arith.constant 0 : i32
    %c0_i32_1 = arith.constant 0 : i32
    return %c0_i32, %c0_i32_0 : i32, i32
  }
  func.func @transform_1(%arg0: i32) -> i32 {
    %c0_i32 = arith.constant 0 : i32
    %c0_i32_0 = arith.constant 0 : i32
    return %c0_i32 : i32
  }
  func.func @transform_2(%arg0: i32) -> (i32, i32) {
    %c0_i32 = arith.constant 0 : i32
    %c0_i32_0 = arith.constant 0 : i32
    %c0_i32_1 = arith.constant 0 : i32
    return %c0_i32, %c0_i32_0 : i32, i32
  }
  func.func @transform_3(%arg0: i32) -> i32 {
    %c0_i32 = arith.constant 0 : i32
    %c0_i32_0 = arith.constant 0 : i32
    return %c0_i32 : i32
  }
  func.func @transform_4(%arg0: i32) -> (i32, i32) {
    %c0_i32 = arith.constant 0 : i32
    %c0_i32_0 = arith.constant 0 : i32
    return %arg0, %c0_i32 : i32, i32
  }
  func.func @transform_5(%arg0: i32) -> (i32, i32) {
    %c0_i32 = arith.constant 0 : i32
    %c0_i32_0 = arith.constant 0 : i32
    %c0_i32_1 = arith.constant 0 : i32
    return %c0_i32, %c0_i32_0 : i32, i32
  }
  func.func @transform_6(%arg0: i32) -> (i32, i32) {
    %c0_i32 = arith.constant 0 : i32
    %c0_i32_0 = arith.constant 0 : i32
    %c0_i32_1 = arith.constant 0 : i32
    return %c0_i32, %c0_i32_0 : i32, i32
  }
  func.func @transform_7(%arg0: i32) -> (i32, i32) {
    %c0_i32 = arith.constant 0 : i32
    %c0_i32_0 = arith.constant 0 : i32
    %c0_i32_1 = arith.constant 0 : i32
    return %c0_i32, %c0_i32_0 : i32, i32
  }
  func.func @transform_8(%arg0: i32) -> (i32, i32) {
    %c0_i32 = arith.constant 0 : i32
    %c0_i32_0 = arith.constant 0 : i32
    %c0_i32_1 = arith.constant 0 : i32
    return %c0_i32, %c0_i32_0 : i32, i32
  }
  func.func @transform_9(%arg0: i32) -> (i32, i32) {
    %c0_i32 = arith.constant 0 : i32
    %c0_i32_0 = arith.constant 0 : i32
    return %arg0, %c0_i32 : i32, i32
  }
}

</mosaic_0001>

<bundles_post_ra>
// kernel: nnconv_forward.1
= control target key start
LH: loop header
LB: loop body
LE: loop exit
PB: predicated region body
PF: predicated region fallthrough
CT: control target
= control target key end

     0   :  { %s3637_s0 = inlined_call_operand.vmem [shape: f32[6,5], index: 0, kind: input, shape index: {}]   ;;  %s3638_s1 = inlined_call_operand.vmem [shape: f32[6], index: 1, kind: input, shape index: {}]   ;;  %s3639_s2 = inlined_call_operand.vmem [shape: f32[6,3], index: 2, kind: input, shape index: {}]   ;;  %s3640_s3 = inlined_call_operand.<no memory space> [shape: f32[1], index: 3, kind: input, shape index: {}]   ;;  %s3641_s4 = inlined_call_operand.vmem [shape: f32[2,671], index: 4, kind: input, shape index: {}]   ;;  %s3642_s5 = inlined_call_operand.hbm [shape: f32[768,128], index: 5, kind: input, shape index: {}]   ;;  %s3643_s6 = inlined_call_operand.vmem [shape: f32[1,128], index: 6, kind: input, shape index: {}]   ;;  %s3644_s7 = inlined_call_operand.vmem [shape: f32[128,30], index: 7, kind: input, shape index: {}]   ;;  %s3645_s8 = inlined_call_operand.vmem [shape: f32[1,30], index: 8, kind: input, shape index: {}]   ;;  %s3646_s9 = inlined_call_operand.hbm [shape: f32[2,30], index: 9, kind: output, shape index: {}]  }
   0x1   :  { %3727 = sst [smem:[#allocation72_spill]] %s3643_s6 }
   0x2   :  { %3728 = sst [smem:[#allocation73_spill]] %s3644_s7 }
   0x3   :  { %3729 = sst [smem:[#allocation74_spill]] %s3645_s8 }
   0x4   :  { %3730 = sst [smem:[#allocation75_spill]] %s3646_s9 }
   0x5   :  { %15 = vsyncpa [#allocation8], 0 }
   0x6   :  { %16 = vsyncpa [#allocation10], 0 }
   0x7   :  { %17 = vsyncpa [#allocation6], 0  ;;  %s35_s11 = sshll.u32 %s3638_s1, 4  ;;  %s36_s11 = int_to_ptr.vmem [resolvable:$true] %s35_s11 }
   0x8   :  { %18 = vsyncpa [#allocation7], 0  ;;  %s25_s14 = sshll.u32 %s3637_s0, 4  ;;  %s1937_s15 = scalar_lea.vmem %s36_s11, 16  ;;  %s26_s14 = int_to_ptr.vmem [resolvable:$true] %s25_s14 }
   0x9   :  { %p1938_p0 = scmp.ne.s32.totalorder %s36_s11, %s1937_s15  ;;  %p1942_p1 = scmp.lt.s32.totalorder %s36_s11, %s36_s11 }
   0xa   :  { %p1943_p2 = scmp.lt.s32.totalorder %s1937_s15, %s1937_s15 }
   0xc   :  { %p1944_p3 = por %p1943_p2, %p1942_p1 }
   0xe   :  { %p1945_p4 = pnand %p1944_p3, %p1938_p0 }
  0x10   :  { %1948 = shalt.err (!%p1945_p4)
}
  0x11   :  { %s2021_s16 = smov [#allocation9]   ;;  %s1949_s17 = scalar_lea.vmem %s26_s14, 128 }
  0x12   :  { %38 = dma.vmem_to_smem %s36_s11, 16, %s2021_s16, [#allocation10]  }
  0x13   :  { %p1950_p5 = scmp.ne.s32.totalorder %s26_s14, %s1949_s17  ;;  %p1954_p6 = scmp.lt.s32.totalorder %s26_s14, %s26_s14 }
  0x14   :  { %p1955_p7 = scmp.lt.s32.totalorder %s1949_s17, %s1949_s17 }
  0x16   :  { %p1956_p8 = por %p1955_p7, %p1954_p6 }
  0x18   :  { %p1957_p9 = pnand %p1956_p8, %p1950_p5 }
  0x1a   :  { %1960 = shalt.err (!%p1957_p9)
}
  0x1b   :  { %s2022_s1 = smov [#allocation5]   ;;  %s45_s19 = sshll.u32 %s3639_s2, 4  ;;  %s46_s19 = int_to_ptr.vmem [resolvable:$true] %s45_s19 }
  0x1c   :  { %28 = dma.vmem_to_smem %s26_s14, 128, %s2022_s1, [#allocation8]  }
  0x1d   :  { %s1961_s20 = scalar_lea.vmem %s46_s19, 128  ;;  %p1966_p11 = scmp.lt.s32.totalorder %s46_s19, %s46_s19 }
  0x1e   :  { %p1962_p10 = scmp.ne.s32.totalorder %s46_s19, %s1961_s20  ;;  %p1967_p12 = scmp.lt.s32.totalorder %s1961_s20, %s1961_s20 }
  0x20   :  { %p1968_p13 = por %p1967_p12, %p1966_p11 }
  0x22   :  { %p1969_p0 = pnand %p1968_p13, %p1962_p10 }
  0x24   :  { %1972 = shalt.err (!%p1969_p0)
}
  0x25   :  { %s2023_s21 = smov [#allocation11]   ;;  %s2024_s22 = smov [#allocation12]  }
  0x26   :  { %48 = dma.vmem_to_smem %s46_s19, 128, %s2023_s21, [#allocation10]  }
  0x27   :  { %s58_s23 = sshll.u32 %s2024_s22, 4  ;;  %s59_s23 = int_to_ptr.vmem [resolvable:$true] %s58_s23 }
  0x28   :  { %s1981_s24 = scalar_lea.vmem %s59_s23, 12288  ;;  %p1986_p2 = scmp.lt.s32.totalorder %s59_s23, %s59_s23 }
  0x29   :  { %p1982_p1 = scmp.ne.s32.totalorder %s59_s23, %s1981_s24  ;;  %p1987_p3 = scmp.lt.s32.totalorder %s1981_s24, %s1981_s24 }
  0x2b   :  { %p1988_p4 = por %p1987_p3, %p1986_p2 }
  0x2d   :  { %p1989_p5 = pnand %p1988_p4, %p1982_p1 }
  0x2f   :  { %1992 = shalt.err (!%p1989_p5)
}
  0x30   :  { %s2025_s2 = smov 128   ;;  %s2026_s25 = smov 8  }
  0x31   :  { %64 = dma.hbm_to_vmem [thread:$0]  %s3642_s5, 12288, %s59_s23, [#allocation6], %s2025_s2, %s2025_s2, %s2026_s25  }
  0x32   :  { %2013 = dma.done.wait [#allocation8], 128  }
  0x33   :  { %2014 = vsyncadd [#allocation8], 4294967168 }
  0x34   :  { %2015 = dma.done.wait [#allocation10], 144  }
  0x35   :  { %2016 = vsyncadd [#allocation10], 4294967152 }
  0x36   :  { %2017 = dma.done.wait [#allocation6], 12288  }
  0x37   :  { %2018 = vsyncadd [#allocation6], 4294955008 }
  0x38   :  { %83 = sfence }
  0x39   :  { %v2100_v0 = vld [vmem:[%s3641_s4] sm:$0xff]  ;;  %v92_v1 = vlaneseq  ;;  %vm88_vm0 = vcmask 1041408   ;;  %v2027_v2 = vmov 1983009808   ;;  %v3652_v4 = vmov 0.0   ;;  %s2029_s10 = smov 2  }
  0x3a   :  { %v114_v3 = vunpack.c.l.s4 %v2027_v2  ;;  %84 = vst [vmem:[#allocation2 + $0xa] sm:$0x3] %v3652_v4  ;;  %v86_v5 = vld [vmem:[%s3641_s4 + $0x8] sm:$0xf]  ;;  %vm89_vm1 = vcmask 248834   ;;  %v112_v10 = vcombine.high %v2100_v0, %v2100_v0  ;;  %s3649_s4 = smov 1  }
  0x3b   :  { %v117_v6 = vshrl.u32 %v92_v1, 7  ;;  %vm90_vm2 = vmor %vm89_vm1, %vm88_vm0  ;;  %s3647_s11 = smov 127   ;;  %s2032_s12 = smov 126   ;;  %v2205_v27 = vand.u32 127, %v92_v1  ;;  %vm2033_vm8 = vmmov 0   ;;  %vm1691_vm9 = vcmask 238592  }
  0x3c   :  { %v115_v7 = vunpack.c.0.s8 %v114_v3  ;;  %91 = vst.msk [vmem:[#allocation2 + $0x8] sm:$0xf] %vm90_vm2, %v86_v5  ;;  %s2130_s13 = sld [smem:[#allocation5]] }
  0x3d   :  { %s2132_s14 = sld [smem:[#allocation5 + $0x80]]  ;;  %3732 = vst [vmem:[#allocation19_spill] sm:$0xff] %v2205_v27  ;;  %vm155_vm3 = vcmp.lt.s32.totalorder %v2205_v27, 2  ;;  %vm174_vm4 = vcmp.lt.s32.totalorder %v2205_v27, 1  ;;  %vm193_vm5 = vcmp.lt.s32.totalorder %v2205_v27, 127  ;;  %vm212_vm6 = vcmp.lt.s32.totalorder %v2205_v27, 126 }
  0x3e   :  { %v2107_v8 = vsub.s32 %v115_v7, %v117_v6  ;;  %s2134_s15 = sld [smem:[#allocation5 + $0x100]] }
  0x3f   :  { %s2136_s16 = sld [smem:[#allocation5 + $0x180]] }
  0x40   :  { %3731 = vst [vmem:[#allocation18_spill] sm:$0xff] %v2107_v8  ;;  %v119_v9 = vrot.slane %v2100_v0, %v2107_v8  ;;  %v126_v14 = vrot.slane %v112_v10, %v2107_v8  ;;  %s2138_s17 = sld [smem:[#allocation5 + $0x200]] }
  0x41   :  { %s2140_s1 = sld [smem:[#allocation5 + $0x280]] }
  0x42   :  { %143 = vrot.lane.b32.xlu0 %v119_v9, %s2029_s10  ;;  %v127_v13 = vcombine.high %v119_v9, %v119_v9  ;;  %v128_v16 = vcombine.high %v126_v14, %v126_v14  ;;  %s2142_s0 = sld [smem:[#allocation5 + $0x1]]  ;;  %v2208_v28 = vstv %s2130_s13 }
  0x43   :  { %v2113_v11 = vld [vmem:[#allocation2 + $0x8] sm:$0xf]  ;;  %s2144_s18 = sld [smem:[#allocation5 + $0x81]]  ;;  %v2211_v29 = vstv %s2132_s14 }
  0x44   :  { %v135_v12 = vrot.slane %v2113_v11, %v2107_v8  ;;  %s2146_s19 = sld [smem:[#allocation5 + $0x101]]  ;;  %v2226_v34 = vstv %s2134_s15 }
  0x45   :  { %s2148_s20 = sld [smem:[#allocation5 + $0x181]]  ;;  %v2229_v35 = vstv %s2136_s16 }
  0x46   :  { %170 = vrot.lane.b32.xlu1 %v135_v12, %s3649_s4  ;;  %151 = vrot.lane.b32.xlu0 %v135_v12, %s2029_s10  ;;  %v136_v15 = vcombine.high %v135_v12, %v135_v12  ;;  %s2150_s21 = sld [smem:[#allocation5 + $0x201]]  ;;  %v2232_v36 = vstv %s2138_s17 }
  0x47   :  { %s2152_s22 = sld [smem:[#allocation5 + $0x281]]  ;;  %v2235_v37 = vstv %s2140_s1 }
  0x48   :  { %s2154_s23 = sld [smem:[#allocation5 + $0x2]]  ;;  %v2240_v38 = vstv %s2142_s0 }
  0x49   :  { %s2156_s24 = sld [smem:[#allocation5 + $0x82]]  ;;  %v2243_v39 = vstv %s2144_s18 }
  0x4a   :  { %145 = vrot.lane.b32.xlu1 %v127_v13, %s2029_s10  ;;  %147 = vrot.lane.b32.xlu0 %v126_v14, %s2029_s10  ;;  %s2158_s2 = sld [smem:[#allocation5 + $0x102]]  ;;  %v2254_v42 = vstv %s2146_s19 }
  0x4b   :  { %s2160_s25 = sld [smem:[#allocation5 + $0x182]]  ;;  %v2257_v43 = vstv %s2148_s20 }
  0x4c   :  { %s2162_s26 = sld [smem:[#allocation5 + $0x202]]  ;;  %v2260_v44 = vstv %s2150_s21 }
  0x4d   :  { %s2164_s27 = sld [smem:[#allocation5 + $0x282]]  ;;  %v2263_v45 = vstv %s2152_s22 }
  0x4e   :  { %172 = vrot.lane.b32.xlu1 %v136_v15, %s3649_s4  ;;  %153 = vrot.lane.b32.xlu0 %v136_v15, %s2029_s10  ;;  %s2166_s28 = sld [smem:[#allocation5 + $0x3]]  ;;  %v242_v17 = vstv %s2154_s23 }
  0x4f   :  { %s2168_s29 = sld [smem:[#allocation5 + $0x83]]  ;;  %v379_v18 = vstv %s2156_s24  ;;  %v244_v21 = vmul.f32 %v242_v17, %v2113_v11  ;;  %v243_v50 = vmul.f32 %v242_v17, %v2100_v0 }
  0x50   :  { %s2170_s5 = sld [smem:[#allocation5 + $0x103]]  ;;  %v534_v19 = vstv %s2158_s2  ;;  %v381_v22 = vmul.f32 %v379_v18, %v2113_v11  ;;  %v380_v51 = vmul.f32 %v379_v18, %v2100_v0 }
  0x51   :  { %s2172_s30 = sld [smem:[#allocation5 + $0x183]]  ;;  %v689_v20 = vstv %s2160_s25  ;;  %v536_v25 = vmul.f32 %v534_v19, %v2113_v11  ;;  %v2216_v30 = vrot.slane %v244_v21, %v2107_v8  ;;  %v535_v52 = vmul.f32 %v534_v19, %v2100_v0 }
  0x52   :  { %149 = vrot.lane.b32.xlu1 %v128_v16, %s2029_s10  ;;  %162 = vrot.lane.b32.xlu0 %v119_v9, %s3649_s4  ;;  %s2174_s10 = sld [smem:[#allocation5 + $0x203]]  ;;  %v844_v23 = vstv %s2162_s26  ;;  %v691_v26 = vmul.f32 %v689_v20, %v2113_v11  ;;  %v2219_v31 = vrot.slane %v381_v22, %v2107_v8  ;;  %v690_v53 = vmul.f32 %v689_v20, %v2100_v0 }
  0x53   :  { %s2184_s9 = sld [smem:[#allocation5 + $0x84]]  ;;  %v999_v24 = vstv %s2164_s27  ;;  %v846_v32 = vmul.f32 %v844_v23, %v2113_v11  ;;  %v2246_v40 = vrot.slane %v536_v25, %v2107_v8  ;;  %v845_v56 = vmul.f32 %v844_v23, %v2100_v0 }
  0x54   :  { %s2186_s8 = sld [smem:[#allocation9 + $0x1]]  ;;  %v1001_v33 = vmul.f32 %v999_v24, %v2113_v11  ;;  %v2249_v41 = vrot.slane %v691_v26, %v2107_v8  ;;  %v1000_v57 = vmul.f32 %v999_v24, %v2100_v0  ;;  %v247_v58 = vcombine.high %v243_v50, %v243_v50 }
  0x55   :  { %s2190_s6 = sld [smem:[#allocation5 + $0x104]]  ;;  %3733 = vst [vmem:[#allocation20_spill] sm:$0xff] %v2246_v40  ;;  %v2272_v48 = vrot.slane %v846_v32, %v2107_v8  ;;  %v384_v59 = vcombine.high %v380_v51, %v380_v51  ;;  %v539_v60 = vcombine.high %v535_v52, %v535_v52  ;;  %v694_v61 = vcombine.high %v690_v53, %v690_v53 }
  0x56   :  { %164 = vrot.lane.b32.xlu1 %v127_v13, %s3649_s4  ;;  %166 = vrot.lane.b32.xlu0 %v126_v14, %s3649_s4  ;;  %s2194_s7 = sld [smem:[#allocation9 + $0x2]]  ;;  %3734 = vst [vmem:[#allocation21_spill] sm:$0xff] %v2249_v41  ;;  %v2275_v49 = vrot.slane %v1001_v33, %v2107_v8  ;;  %v849_v1 = vcombine.high %v845_v56, %v845_v56  ;;  %v2302_v3 = vstv %s2166_s28  ;;  %v2305_v0 = vstv %s2168_s29 }
  0x57   :  { %s2198_s23 = sld [smem:[#allocation5 + $0x184]]  ;;  %3735 = vst [vmem:[#allocation22_spill] sm:$0xff] %v2272_v48  ;;  %v1004_v2 = vcombine.high %v1000_v57, %v1000_v57  ;;  %v2308_v5 = vrot.slane %v243_v50, %v2107_v8  ;;  %v2311_v6 = vrot.slane %v380_v51, %v2107_v8  ;;  %v2316_v7 = vrot.slane %v535_v52, %v2107_v8 }
  0x58   :  { %s2202_s24 = sld [smem:[#allocation9 + $0x3]]  ;;  %3736 = vst [vmem:[#allocation23_spill] sm:$0xff] %v2275_v49  ;;  %v2322_v10 = vrot.slane %v845_v56, %v2107_v8  ;;  %v2325_v11 = vrot.slane %v1000_v57, %v2107_v8  ;;  %v2348_v17 = vstv %s2172_s30  ;;  %v2351_v18 = vrot.slane %v849_v1, %v2107_v8 }
  0x59   :  { %s2213_s2 = sld [smem:[#allocation5 + $0x204]]  ;;  %3737 = vst [vmem:[#allocation24_spill] sm:$0xff] %v2308_v5  ;;  %3738 = vst [vmem:[#allocation25_spill] sm:$0xff] %v2311_v6  ;;  %v2354_v19 = vrot.slane %v1004_v2, %v2107_v8  ;;  %v2361_v21 = vstv %s2174_s10  ;;  %v2406_v1 = vstv %s2184_s9 }
  0x5a   :  { %168 = vrot.lane.b32.xlu1 %v128_v16, %s3649_s4  ;;  %181 = vrot.lane.b32.xlu0 %v119_v9, %s3647_s11  ;;  %s2180_s4 = sld [smem:[#allocation9]]  ;;  %3739 = vst [vmem:[#allocation26_spill] sm:$0xff] %v2316_v7  ;;  %3741 = vst [vmem:[#allocation28_spill] sm:$0xff] %v2322_v10  ;;  %v2409_v2 = vstv %s2186_s8 }
  0x5b   :  { %s2223_s13 = sld [smem:[#allocation5 + $0x284]]  ;;  %3742 = vst [vmem:[#allocation29_spill] sm:$0xff] %v2325_v11  ;;  %3748 = vst [vmem:[#allocation35_spill] sm:$0xff] %v2348_v17  ;;  %v2412_v4 = vstv %s2190_s6  ;;  %s3879_s6 = smov 1  }
  0x5c   :  { %s2237_s14 = sld [smem:[#allocation9 + $0x4]]  ;;  %3749 = vst [vmem:[#allocation36_spill] sm:$0xff] %v2351_v18  ;;  %3750 = vst [vmem:[#allocation37_spill] sm:$0xff] %v2354_v19  ;;  %v2415_v57 = vstv %s2194_s7  ;;  %s3880_s7 = smov 127  }
  0x5d   :  { %s2251_s15 = sld [smem:[#allocation9 + $0x5]]  ;;  %3751 = vst [vmem:[#allocation38_spill] sm:$0xff] %v2361_v21  ;;  %3755 = vst [vmem:[#allocation42_spill] sm:$0xff] %v2406_v1  ;;  %v2418_v56 = vstv %s2198_s23 }
  0x5e   :  { %191 = vrot.lane.b32.xlu1 %v136_v15, %s3647_s11  ;;  %183 = vrot.lane.b32.xlu0 %v127_v13, %s3647_s11  ;;  %s2265_s16 = sld [smem:[#allocation11]]  ;;  %3756 = vst [vmem:[#allocation43_spill] sm:$0xff] %v2409_v2  ;;  %3757 = vst [vmem:[#allocation44_spill] sm:$0xff] %v2412_v4 }
  0x5f   :  { %s2277_s17 = sld [smem:[#allocation11 + $0x80]]  ;;  %3758 = vst [vmem:[#allocation45_spill] sm:$0xff] %v2415_v57  ;;  %3759 = vst [vmem:[#allocation46_spill] sm:$0xff] %v2418_v56  ;;  %v2424_v52 = vstv %s2213_s2 }
  0x60   :  { %s2283_s1 = sld [smem:[#allocation11 + $0x100]]  ;;  %3761 = vst [vmem:[#allocation48_spill] sm:$0xff] %v2424_v52 }
  0x61   :  { %s2291_s0 = sld [smem:[#allocation11 + $0x180]]  ;;  %v2427_v51 = vstv %s2223_s13 }
  0x62   :  { %185 = vrot.lane.b32.xlu1 %v126_v14, %s3647_s11  ;;  %187 = vrot.lane.b32.xlu0 %v128_v16, %s3647_s11  ;;  %s2293_s18 = sld [smem:[#allocation11 + $0x200]]  ;;  %3762 = vst [vmem:[#allocation49_spill] sm:$0xff] %v2427_v51  ;;  %v2436_v32 = vstv %s2237_s14 }
  0x63   :  { %s2299_s19 = sld [smem:[#allocation11 + $0x280]]  ;;  %3765 = vst [vmem:[#allocation52_spill] sm:$0xff] %v2436_v32  ;;  %v2439_v26 = vstv %s2251_s15  ;;  %s2034_s15 = smov [#allocation13]  }
  0x64   :  { %s2313_s20 = sld [smem:[#allocation11 + $0x2]]  ;;  %v2430_v50 = vstv %s2265_s16  ;;  %3766 = vst [vmem:[#allocation53_spill] sm:$0xff] %v2439_v26  ;;  %s1699_s16 = sshll.u32 %s2034_s15, 4  ;;  %s1700_s16 = int_to_ptr.vmem [resolvable:$true] %s1699_s16 }
  0x65   :  { %s2327_s21 = sld [smem:[#allocation11 + $0x82]]  ;;  %3763 = vst [vmem:[#allocation50_spill] sm:$0xff] %v2430_v50  ;;  %v2433_v33 = vstv %s2277_s17  ;;  %s1993_s17 = scalar_lea.vmem %s1700_s16, 32 }
  0x66   :  { %189 = vrot.lane.b32.xlu1 %v135_v12, %s3647_s11  ;;  %200 = vrot.lane.b32.xlu0 %v119_v9, %s2032_s12  ;;  %s2178_s11 = sld [smem:[#allocation5 + $0x4]]  ;;  %v2319_v9 = vrot.slane %v690_v53, %v2107_v8  ;;  %v2421_v53 = vstv %s2202_s24  ;;  %3764 = vst [vmem:[#allocation51_spill] sm:$0xff] %v2433_v33  ;;  %v2442_v25 = vstv %s2283_s1  ;;  %p1994_p6 = scmp.ne.s32.totalorder %s1700_s16, %s1993_s17 }
  0x67   :  { %s2342_s22 = sld [smem:[#allocation11 + $0x102]]  ;;  %3760 = vst [vmem:[#allocation47_spill] sm:$0xff] %v2421_v53  ;;  %3767 = vst [vmem:[#allocation54_spill] sm:$0xff] %v2442_v25  ;;  %v2445_v24 = vstv %s2291_s0  ;;  %p1998_p7 = scmp.lt.s32.totalorder %s1700_s16, %s1700_s16 }
  0x68   :  { %3740 = vst [vmem:[#allocation27_spill] sm:$0xff] %v2319_v9  ;;  %s2356_s25 = sld [smem:[#allocation11 + $0x182]]  ;;  %3768 = vst [vmem:[#allocation55_spill] sm:$0xff] %v2445_v24  ;;  %v2448_v23 = vstv %s2293_s18  ;;  %p1999_p8 = scmp.lt.s32.totalorder %s1993_s17, %s1993_s17 }
  0x69   :  { %s2370_s26 = sld [smem:[#allocation11 + $0x202]]  ;;  %3769 = vst [vmem:[#allocation56_spill] sm:$0xff] %v2448_v23  ;;  %v2451_v63 = vstv %s2299_s19 }
  0x6a   :  { %210 = vrot.lane.b32.xlu1 %v136_v15, %s2032_s12  ;;  %202 = vrot.lane.b32.xlu0 %v127_v13, %s2032_s12  ;;  %v2334_v13 = vrot.slane %v384_v59, %v2107_v8  ;;  %v2340_v15 = vrot.slane %v694_v61, %v2107_v8  ;;  %s2380_s27 = sld [smem:[#allocation11 + $0x282]]  ;;  %v2399_v59 = vstv %s2180_s4  ;;  %3770 = vst [vmem:[#allocation57_spill] sm:$0xff] %v2451_v63  ;;  %v2454_v54 = vstv %s2313_s20  ;;  %p2000_p9 = por %p1999_p8, %p1998_p7 }
  0x6b   :  { %3754 = vst [vmem:[#allocation41_spill] sm:$0xff] %v2399_v59  ;;  %3771 = vst [vmem:[#allocation58_spill] sm:$0xff] %v2454_v54  ;;  %v2457_v47 = vstv %s2327_s21  ;;  %s3364_s8 = sld [smem:[#allocation11 + $0x1]] }
  0x6c   :  { %3744 = vst [vmem:[#allocation31_spill] sm:$0xff] %v2334_v13  ;;  %3746 = vst [vmem:[#allocation33_spill] sm:$0xff] %v2340_v15  ;;  %s3369_s9 = sld [smem:[#allocation11 + $0x81]]  ;;  %p2001_p10 = pnand %p2000_p9, %p1994_p6 }
  0x6d   :  { %3772 = vst [vmem:[#allocation59_spill] sm:$0xff] %v2457_v47  ;;  %v2460_v46 = vstv %s2342_s22  ;;  %s3379_s4 = sld [smem:[#allocation11 + $0x101]] }
  0x6e   :  { %204 = vrot.lane.b32.xlu1 %v126_v14, %s2032_s12  ;;  %206 = vrot.lane.b32.xlu0 %v128_v16, %s2032_s12  ;;  %v2337_v14 = vrot.slane %v539_v60, %v2107_v8  ;;  %v2345_v16 = vstv %s2170_s5  ;;  %3773 = vst [vmem:[#allocation60_spill] sm:$0xff] %v2460_v46  ;;  %s3392_s28 = sld [smem:[#allocation11 + $0x201]] }
  0x6f   :  { %3747 = vst [vmem:[#allocation34_spill] sm:$0xff] %v2345_v16  ;;  %v2471_v23 = vstv %s2370_s26  ;;  %s3404_s29 = sld [smem:[#allocation11 + $0x281]] }
  0x70   :  { %3745 = vst [vmem:[#allocation32_spill] sm:$0xff] %v2337_v14  ;;  %3775 = vst [vmem:[#allocation62_spill] sm:$0xff] %v2471_v23  ;;  %v2474_v63 = vstv %s2380_s27  ;;  %s3897_s2 = sld [smem:[#allocation72_spill]] }
  0x71   :  { %3776 = vst [vmem:[#allocation63_spill] sm:$0xff] %v2474_v63  ;;  %s3898_s14 = sld [smem:[#allocation74_spill]] }
  0x72   :  { %208 = vrot.lane.b32.xlu1 %v135_v12, %s2032_s12  ;;  %s2176_s12 = sld [smem:[#allocation5 + $0x283]]  ;;  %v2331_v12 = vrot.slane %v247_v58, %v2107_v8  ;;  %v2396_v58 = vstv %s2178_s11  ;;  %v2463_v8 = vstv %s2356_s25 }
  0x73   :  { %3753 = vst [vmem:[#allocation40_spill] sm:$0xff] %v2396_v58  ;;  %3774 = vst [vmem:[#allocation61_spill] sm:$0xff] %v2463_v8  ;;  %v2486_v8 = vadd.s32 640, %v2205_v27  ;;  %s3385_s11 = sld [smem:[#allocation11 + $0x181]] }
  0x74   :  { %3743 = vst [vmem:[#allocation30_spill] sm:$0xff] %v2331_v12 }
  0x75   :  { %3777 = vst [vmem:[#allocation64_spill] sm:$0xff] %v2486_v8 }
  0x78   :  { %v2364_v22 = vstv %s2176_s12  ;;  %s3896_s12 = sld [smem:[#allocation73_spill]] }
  0x79   :  { %3752 = vst [vmem:[#allocation39_spill] sm:$0xff] %v2364_v22 }
  0xb4   :  { %v2358_v20 = vpop.permute.xlu0 %143 }
  0xb8   :  { %v2401_v60 = vpop.permute.xlu1 %170  ;;  %v2403_v61 = vpop.permute.xlu0 %151 }
  0xbc   :  { %v146_v62 = vpop.permute.xlu1 %145  ;;  %v148_v55 = vpop.permute.xlu0 %147 }
  0xbd   :  { %v160_v25 = vsel %vm155_vm3, %v2358_v20, %v146_v62  ;;  %v159_v24 = vsel %vm155_vm3, %v146_v62, %v148_v55 }
  0xbe   :  { %v2477_v26 = vmul.f32 %v2208_v28, %v160_v25  ;;  %v2480_v47 = vmul.f32 %v2211_v29, %v160_v25  ;;  %v2483_v46 = vmul.f32 %v2226_v34, %v160_v25  ;;  %v2489_v54 = vmul.f32 %v2229_v35, %v160_v25 }
  0xbf   :  { %v2492_v62 = vmul.f32 %v2232_v36, %v160_v25  ;;  %v2495_v63 = vmul.f32 %v2235_v37, %v160_v25  ;;  %v2498_v23 = vmul.f32 %v2208_v28, %v159_v24  ;;  %v2501_v32 = vmul.f32 %v2211_v29, %v159_v24 }
  0xc0   :  { %v2504_v33 = vmul.f32 %v2226_v34, %v159_v24  ;;  %v2507_v8 = vmul.f32 %v2229_v35, %v159_v24  ;;  %v2510_v50 = vmul.f32 %v2232_v36, %v159_v24  ;;  %v173_v53 = vpop.permute.xlu1 %172  ;;  %v154_v57 = vpop.permute.xlu0 %153  ;;  %v2513_v25 = vmul.f32 %v2235_v37, %v159_v24 }
  0xc1   :  { %v175_v2 = vsel %vm174_vm4, %v2401_v60, %v173_v53  ;;  %v156_v59 = vsel %vm155_vm3, %v2403_v61, %v154_v57  ;;  %v161_v51 = vsel %vm155_vm3, %v154_v57, %v2358_v20 }
  0xc2   :  { %v234_v52 = vmul.f32 %v2240_v38, %v175_v2  ;;  %v371_v56 = vmul.f32 %v2243_v39, %v175_v2  ;;  %v526_v4 = vmul.f32 %v2254_v42, %v175_v2  ;;  %v681_v24 = vmul.f32 %v2257_v43, %v175_v2 }
  0xc3   :  { %v836_v1 = vmul.f32 %v2260_v44, %v175_v2  ;;  %v991_v58 = vmul.f32 %v2263_v45, %v175_v2  ;;  %v221_v19 = vmul.f32 %v2208_v28, %v161_v51  ;;  %v226_v18 = vmul.f32 %v2208_v28, %v156_v59 }
  0xc4   :  { %v358_v15 = vmul.f32 %v2211_v29, %v161_v51  ;;  %v363_v20 = vmul.f32 %v2211_v29, %v156_v59  ;;  %v513_v57 = vmul.f32 %v2226_v34, %v161_v51  ;;  %v518_v14 = vmul.f32 %v2226_v34, %v156_v59  ;;  %v150_v13 = vpop.permute.xlu1 %149  ;;  %v163_v12 = vpop.permute.xlu0 %162 }
  0xc5   :  { %v2536_v11 = vadd.f32 %v234_v52, %v226_v18  ;;  %v668_v10 = vmul.f32 %v2229_v35, %v161_v51  ;;  %v673_v2 = vmul.f32 %v2229_v35, %v156_v59  ;;  %v823_v9 = vmul.f32 %v2232_v36, %v161_v51 }
  0xc6   :  { %v2542_v7 = vadd.f32 %v371_v56, %v363_v20  ;;  %v2544_v6 = vadd.f32 %v526_v4, %v518_v14  ;;  %v828_v5 = vmul.f32 %v2232_v36, %v156_v59  ;;  %v978_v22 = vmul.f32 %v2235_v37, %v161_v51 }
  0xc7   :  { %v2548_v49 = vadd.f32 %v681_v24, %v673_v2  ;;  %v983_v18 = vmul.f32 %v2235_v37, %v156_v59  ;;  %v157_v52 = vsel %vm155_vm3, %v150_v13, %v2403_v61  ;;  %v158_v21 = vsel %vm155_vm3, %v148_v55, %v150_v13 }
  0xc8   :  { %v2556_v48 = vadd.f32 %v836_v1, %v828_v5  ;;  %v224_v4 = vmul.f32 %v2208_v28, %v158_v21  ;;  %v225_v14 = vmul.f32 %v2208_v28, %v157_v52  ;;  %v2561_v56 = vmul.f32 %v2211_v29, %v158_v21  ;;  %v165_v51 = vpop.permute.xlu1 %164 }
  0xc9   :  { %3778 = vst [vmem:[#allocation65_spill] sm:$0xff] %v2548_v49  ;;  %v2563_v24 = vadd.f32 %v991_v58, %v983_v18  ;;  %v2566_v59 = vmul.f32 %v2211_v29, %v157_v52  ;;  %v2569_v61 = vmul.f32 %v2226_v34, %v158_v21  ;;  %v2572_v55 = vmul.f32 %v2226_v34, %v157_v52  ;;  %v167_v29 = vpop.permute.xlu0 %166 }
  0xca   :  { %3779 = vst [vmem:[#allocation66_spill] sm:$0xff] %v2556_v48  ;;  %v2575_v5 = vmul.f32 %v2229_v35, %v158_v21  ;;  %v2578_v28 = vmul.f32 %v2229_v35, %v157_v52  ;;  %v2581_v13 = vmul.f32 %v2232_v36, %v158_v21  ;;  %v2584_v58 = vmul.f32 %v2232_v36, %v157_v52 }
  0xcb   :  { %3780 = vst [vmem:[#allocation67_spill] sm:$0xff] %v2563_v24  ;;  %v2587_v1 = vmul.f32 %v2235_v37, %v158_v21  ;;  %v2590_v20 = vmul.f32 %v2235_v37, %v157_v52  ;;  %v180_v34 = vsel %vm174_vm4, %v173_v53, %v163_v12  ;;  %v179_v35 = vsel %vm174_vm4, %v163_v12, %v165_v51 }
  0xcc   :  { %v229_v2 = vmul.f32 %v2240_v38, %v180_v34  ;;  %v366_v18 = vmul.f32 %v2243_v39, %v180_v34  ;;  %v521_v36 = vmul.f32 %v2254_v42, %v180_v34  ;;  %v676_v24 = vmul.f32 %v2257_v43, %v180_v34  ;;  %v169_v48 = vpop.permute.xlu1 %168 }
  0xcd   :  { %3781 = vst [vmem:[#allocation68_spill] sm:$0xff] %v2587_v1  ;;  %3782 = vst [vmem:[#allocation69_spill] sm:$0xff] %v2590_v20  ;;  %v831_v21 = vmul.f32 %v2260_v44, %v180_v34  ;;  %v986_v37 = vmul.f32 %v2263_v45, %v180_v34  ;;  %v230_v52 = vmul.f32 %v2240_v38, %v179_v35 }
  0xce   :  { %v367_v53 = vmul.f32 %v2243_v39, %v179_v35  ;;  %v2604_v17 = vadd.f32 %v229_v2, %v221_v19  ;;  %v2606_v12 = vadd.f32 %v366_v18, %v358_v15  ;;  %v2608_v41 = vadd.f32 %v521_v36, %v513_v57 }
  0xcf   :  { %v2610_v49 = vadd.f32 %v676_v24, %v668_v10  ;;  %v2612_v20 = vadd.f32 %v831_v21, %v823_v9  ;;  %v2614_v1 = vadd.f32 %v986_v37, %v978_v22  ;;  %v2617_v16 = vadd.f32 %v230_v52, %v2477_v26  ;;  %v2626_v10 = vpop.permute.xlu0 %181 }
  0xd0   :  { %v2620_v34 = vadd.f32 %v367_v53, %v2480_v47  ;;  %v522_v40 = vmul.f32 %v2254_v42, %v179_v35  ;;  %v677_v19 = vmul.f32 %v2257_v43, %v179_v35  ;;  %v832_v15 = vmul.f32 %v2260_v44, %v179_v35  ;;  %v2628_v9 = vpop.permute.xlu1 %191 }
  0xd1   :  { %v987_v57 = vmul.f32 %v2263_v45, %v179_v35  ;;  %v178_v22 = vsel %vm174_vm4, %v165_v51, %v167_v29  ;;  %v176_v47 = vsel %vm174_vm4, %v169_v48, %v2401_v60  ;;  %v177_v26 = vsel %vm174_vm4, %v167_v29, %v169_v48 }
  0xd2   :  { %v199_v24 = vsel %vm193_vm5, %v2628_v9, %v2626_v10  ;;  %v2642_v35 = vadd.f32 %v522_v40, %v2483_v46  ;;  %v2645_v2 = vadd.f32 %v677_v19, %v2489_v54  ;;  %v2648_v51 = vadd.f32 %v832_v15, %v2492_v62 }
  0xd3   :  { %v2651_v18 = vadd.f32 %v987_v57, %v2495_v63  ;;  %v231_v60 = vmul.f32 %v2240_v38, %v178_v22  ;;  %v368_v48 = vmul.f32 %v2243_v39, %v178_v22  ;;  %v523_v29 = vmul.f32 %v2254_v42, %v178_v22 }
  0xd4   :  { %v678_v36 = vmul.f32 %v2257_v43, %v178_v22  ;;  %v833_v40 = vmul.f32 %v2260_v44, %v178_v22  ;;  %v988_v46 = vmul.f32 %v2263_v45, %v178_v22  ;;  %v232_v54 = vmul.f32 %v2240_v38, %v177_v26 }
  0xd5   :  { %v233_v62 = vmul.f32 %v2240_v38, %v176_v47  ;;  %v2662_v21 = vadd.f32 %v231_v60, %v2498_v23  ;;  %v2665_v63 = vadd.f32 %v368_v48, %v2501_v32  ;;  %v2668_v37 = vadd.f32 %v523_v29, %v2504_v33 }
  0xd6   :  { %v2671_v52 = vadd.f32 %v678_v36, %v2507_v8  ;;  %v2674_v53 = vadd.f32 %v833_v40, %v2510_v50  ;;  %v2677_v19 = vadd.f32 %v988_v46, %v2513_v25  ;;  %v2679_v15 = vadd.f32 %v232_v54, %v224_v4  ;;  %v3790_v40 = vld [vmem:[#allocation68_spill] sm:$0xff] }
  0xd7   :  { %v2681_v38 = vadd.f32 %v233_v62, %v225_v14  ;;  %v369_v23 = vmul.f32 %v2243_v39, %v177_v26  ;;  %v370_v32 = vmul.f32 %v2243_v39, %v176_v47  ;;  %v524_v33 = vmul.f32 %v2254_v42, %v177_v26 }
  0xd8   :  { %v525_v57 = vmul.f32 %v2254_v42, %v176_v47  ;;  %v679_v8 = vmul.f32 %v2257_v43, %v177_v26  ;;  %v680_v50 = vmul.f32 %v2257_v43, %v176_v47  ;;  %v834_v22 = vmul.f32 %v2260_v44, %v177_v26 }
  0xd9   :  { %v835_v25 = vmul.f32 %v2260_v44, %v176_v47  ;;  %v2692_v4 = vadd.f32 %v369_v23, %v2561_v56  ;;  %v2695_v14 = vadd.f32 %v370_v32, %v2566_v59  ;;  %v2698_v39 = vadd.f32 %v524_v33, %v2569_v61  ;;  %v3794_v23 = vld [vmem:[#allocation65_spill] sm:$0xff] }
  0xda   :  { %v2701_v60 = vadd.f32 %v525_v57, %v2572_v55  ;;  %v2704_v42 = vadd.f32 %v679_v8, %v2575_v5  ;;  %v2707_v43 = vadd.f32 %v680_v50, %v2578_v28  ;;  %v2710_v44 = vadd.f32 %v834_v22, %v2581_v13  ;;  %v3795_v32 = vld [vmem:[#allocation21_spill] sm:$0xff]  ;;  %v3800_v22 = vld [vmem:[#allocation66_spill] sm:$0xff] }
  0xdb   :  { %v2713_v56 = vadd.f32 %v835_v25, %v2584_v58  ;;  %v989_v59 = vmul.f32 %v2263_v45, %v177_v26  ;;  %v990_v61 = vmul.f32 %v2263_v45, %v176_v47  ;;  %v3785_v55 = vcombine.high %v2216_v30, %v2216_v30  ;;  %v3787_v58 = vld [vmem:[#allocation20_spill] sm:$0xff]  ;;  %v3789_v45 = vld [vmem:[#allocation34_spill] sm:$0xff] }
  0xdc   :  { %3783 = vst [vmem:[#allocation70_spill] sm:$0xff] %v2704_v42  ;;  %3784 = vst [vmem:[#allocation71_spill] sm:$0xff] %v2710_v44  ;;  %v291_v5 = vmul.f32 %v2302_v3, %v199_v24  ;;  %v3786_v28 = vcombine.high %v2219_v31, %v2219_v31  ;;  %v428_v29 = vmul.f32 %v2305_v0, %v199_v24  ;;  %v3801_v25 = vld [vmem:[#allocation22_spill] sm:$0xff] }
  0xdd   :  { %v283_v48 = vadd.f32 %v3785_v55, %v2536_v11  ;;  %v3788_v26 = vcombine.high %v3787_v58, %v3787_v58  ;;  %v583_v47 = vmul.f32 %v3789_v45, %v199_v24  ;;  %v2733_v46 = vadd.f32 %v989_v59, %v3790_v40  ;;  %v3792_v11 = vld [vmem:[#allocation69_spill] sm:$0xff] }
  0xde   :  { %v420_v13 = vadd.f32 %v3786_v28, %v2542_v7  ;;  %v2736_v54 = vadd.f32 %v990_v61, %v3792_v11  ;;  %v3796_v7 = vcombine.high %v3795_v32, %v3795_v32  ;;  %v3802_v59 = vcombine.high %v3801_v25, %v3801_v25  ;;  %v3803_v61 = vld [vmem:[#allocation38_spill] sm:$0xff]  ;;  %v3807_v11 = vld [vmem:[#allocation39_spill] sm:$0xff] }
  0xdf   :  { %v575_v36 = vadd.f32 %v3788_v26, %v2544_v6  ;;  %3791 = vst [vmem:[#allocation20_spill] sm:$0xff] %v2733_v46  ;;  %v2738_v62 = vadd.f32 %v291_v5, %v283_v48  ;;  %v3799_v6 = vld [vmem:[#allocation35_spill] sm:$0xff]  ;;  %v893_v28 = vmul.f32 %v3803_v61, %v199_v24 }
  0xe0   :  { %v730_v33 = vadd.f32 %v3796_v7, %v3794_v23  ;;  %v2744_v57 = vadd.f32 %v428_v29, %v420_v13  ;;  %v738_v50 = vmul.f32 %v3799_v6, %v199_v24  ;;  %v885_v55 = vadd.f32 %v3802_v59, %v3800_v22  ;;  %v3804_v48 = vld [vmem:[#allocation67_spill] sm:$0xff]  ;;  %v3808_v13 = vld [vmem:[#allocation24_spill] sm:$0xff]  ;;  %v3811_v22 = vld [vmem:[#allocation26_spill] sm:$0xff] }
  0xe1   :  { %3793 = vst [vmem:[#allocation34_spill] sm:$0xff] %v2738_v62  ;;  %v2746_v8 = vadd.f32 %v583_v47, %v575_v36  ;;  %v3805_v5 = vld [vmem:[#allocation23_spill] sm:$0xff]  ;;  %v1048_v23 = vmul.f32 %v3807_v11, %v199_v24  ;;  %v278_v29 = vadd.f32 %v3808_v13, %v2604_v17  ;;  %v184_v36 = vpop.permute.xlu0 %183  ;;  %v186_v47 = vpop.permute.xlu1 %185  ;;  %v570_v59 = vadd.f32 %v3811_v22, %v2608_v41  ;;  %v3815_v24 = vld [vmem:[#allocation28_spill] sm:$0xff] }
  0xe2   :  { %3797 = vst [vmem:[#allocation68_spill] sm:$0xff] %v2744_v57  ;;  %v3806_v26 = vcombine.high %v3805_v5, %v3805_v5  ;;  %v2761_v7 = vadd.f32 %v738_v50, %v730_v33  ;;  %v3812_v62 = vld [vmem:[#allocation27_spill] sm:$0xff]  ;;  %v2769_v44 = vadd.f32 %v893_v28, %v885_v55  ;;  %v880_v17 = vadd.f32 %v3815_v24, %v2612_v20 }
  0xe3   :  { %3798 = vst [vmem:[#allocation69_spill] sm:$0xff] %v2746_v8  ;;  %v3810_v8 = vld [vmem:[#allocation25_spill] sm:$0xff]  ;;  %v725_v46 = vadd.f32 %v3812_v62, %v2610_v49  ;;  %v197_v41 = vsel %vm193_vm5, %v184_v36, %v186_v47  ;;  %v3817_v49 = vcombine.high %v3808_v13, %v3808_v13 }
  0xe4   :  { %v1040_v40 = vadd.f32 %v3806_v26, %v3804_v48  ;;  %3809 = vst [vmem:[#allocation65_spill] sm:$0xff] %v2761_v7  ;;  %v415_v57 = vadd.f32 %v3810_v8, %v2606_v12  ;;  %3813 = vst [vmem:[#allocation21_spill] sm:$0xff] %v2769_v44  ;;  %v3816_v26 = vld [vmem:[#allocation29_spill] sm:$0xff]  ;;  %v198_v12 = vsel %vm193_vm5, %v2626_v10, %v184_v36 }
  0xe5   :  { %v1035_v33 = vadd.f32 %v3816_v26, %v2614_v1  ;;  %v279_v50 = vadd.f32 %v3817_v49, %v2617_v16  ;;  %v3818_v55 = vcombine.high %v3810_v8, %v3810_v8  ;;  %v286_v28 = vmul.f32 %v2302_v3, %v198_v12 }
  0xe6   :  { %v2771_v48 = vadd.f32 %v1048_v23, %v1040_v40  ;;  %v423_v1 = vmul.f32 %v2305_v0, %v198_v12  ;;  %v578_v40 = vmul.f32 %v3789_v45, %v198_v12  ;;  %v733_v10 = vmul.f32 %v3799_v6, %v198_v12 }
  0xe7   :  { %v416_v20 = vadd.f32 %v3818_v55, %v2620_v34  ;;  %v888_v23 = vmul.f32 %v3803_v61, %v198_v12  ;;  %v1043_v36 = vmul.f32 %v3807_v11, %v198_v12  ;;  %v287_v13 = vmul.f32 %v2302_v3, %v197_v41 }
  0xe8   :  { %3814 = vst [vmem:[#allocation35_spill] sm:$0xff] %v2771_v48  ;;  %v424_v16 = vmul.f32 %v2305_v0, %v197_v41  ;;  %v2798_v49 = vadd.f32 %v286_v28, %v278_v29  ;;  %v2800_v8 = vadd.f32 %v423_v1, %v415_v57  ;;  %v2802_v34 = vadd.f32 %v578_v40, %v570_v59  ;;  %v188_v1 = vpop.permute.xlu0 %187 }
  0xe9   :  { %v2804_v55 = vadd.f32 %v733_v10, %v725_v46  ;;  %v2806_v48 = vadd.f32 %v888_v23, %v880_v17  ;;  %v2808_v44 = vadd.f32 %v1043_v36, %v1035_v33  ;;  %v2810_v7 = vadd.f32 %v287_v13, %v279_v50 }
  0xea   :  { %v2812_v42 = vadd.f32 %v424_v16, %v416_v20  ;;  %v3819_v12 = vcombine.high %v3811_v22, %v3811_v22  ;;  %v579_v57 = vmul.f32 %v3789_v45, %v197_v41  ;;  %v3820_v46 = vcombine.high %v3812_v62, %v3812_v62  ;;  %v3823_v62 = vld [vmem:[#allocation30_spill] sm:$0xff]  ;;  %v3827_v16 = vld [vmem:[#allocation36_spill] sm:$0xff] }
  0xeb   :  { %v734_v17 = vmul.f32 %v3799_v6, %v197_v41  ;;  %v3821_v33 = vcombine.high %v3815_v24, %v3815_v24  ;;  %v889_v20 = vmul.f32 %v3803_v61, %v197_v41  ;;  %v1044_v28 = vmul.f32 %v3807_v11, %v197_v41  ;;  %v3824_v24 = vld [vmem:[#allocation31_spill] sm:$0xff]  ;;  %v3826_v41 = vld [vmem:[#allocation33_spill] sm:$0xff] }
  0xec   :  { %v571_v29 = vadd.f32 %v3819_v12, %v2642_v35  ;;  %v726_v59 = vadd.f32 %v3820_v46, %v2645_v2  ;;  %v3822_v35 = vcombine.high %v3816_v26, %v3816_v26  ;;  %v280_v10 = vadd.f32 %v3823_v62, %v2662_v21  ;;  %v3825_v26 = vld [vmem:[#allocation32_spill] sm:$0xff]  ;;  %v190_v46 = vpop.permute.xlu1 %189 }
  0xed   :  { %v881_v50 = vadd.f32 %v3821_v33, %v2648_v51  ;;  %v417_v51 = vadd.f32 %v3824_v24, %v2665_v63  ;;  %v727_v13 = vadd.f32 %v3826_v41, %v2671_v52  ;;  %v882_v12 = vadd.f32 %v3827_v16, %v2674_v53 }
  0xee   :  { %v1036_v22 = vadd.f32 %v3822_v35, %v2651_v18  ;;  %v2834_v40 = vadd.f32 %v579_v57, %v571_v29  ;;  %v2836_v2 = vadd.f32 %v734_v17, %v726_v59  ;;  %v572_v18 = vadd.f32 %v3825_v26, %v2668_v37  ;;  %v3828_v29 = vld [vmem:[#allocation37_spill] sm:$0xff] }
  0xef   :  { %v2842_v23 = vadd.f32 %v889_v20, %v881_v50  ;;  %v1037_v57 = vadd.f32 %v3828_v29, %v2677_v19  ;;  %v196_v21 = vsel %vm193_vm5, %v186_v47, %v188_v1  ;;  %v282_v63 = vadd.f32 %v2216_v30, %v2681_v38 }
  0xf0   :  { %v2844_v36 = vadd.f32 %v1044_v28, %v1036_v22  ;;  %v288_v59 = vmul.f32 %v2302_v3, %v196_v21  ;;  %v425_v37 = vmul.f32 %v2305_v0, %v196_v21  ;;  %v580_v17 = vmul.f32 %v3789_v45, %v196_v21 }
  0xf1   :  { %v735_v52 = vmul.f32 %v3799_v6, %v196_v21  ;;  %v890_v53 = vmul.f32 %v3803_v61, %v196_v21  ;;  %v1045_v19 = vmul.f32 %v3807_v11, %v196_v21  ;;  %v419_v47 = vadd.f32 %v2219_v31, %v2695_v14 }
  0xf2   :  { %v574_v30 = vadd.f32 %v3787_v58, %v2701_v60  ;;  %v2869_v38 = vadd.f32 %v288_v59, %v280_v10  ;;  %v2871_v33 = vadd.f32 %v425_v37, %v417_v51  ;;  %v2873_v50 = vadd.f32 %v580_v17, %v572_v18  ;;  %v3834_v59 = vld [vmem:[#allocation71_spill] sm:$0xff] }
  0xf3   :  { %v2875_v20 = vadd.f32 %v735_v52, %v727_v13  ;;  %v2877_v35 = vadd.f32 %v890_v53, %v882_v12  ;;  %v2879_v22 = vadd.f32 %v1045_v19, %v1037_v57  ;;  %v729_v28 = vadd.f32 %v3795_v32, %v2707_v43  ;;  %v3832_v12 = vld [vmem:[#allocation70_spill] sm:$0xff]  ;;  %v3836_v53 = vld [vmem:[#allocation20_spill] sm:$0xff] }
  0xf4   :  { %v884_v31 = vadd.f32 %v3801_v25, %v2713_v56  ;;  %v1039_v14 = vadd.f32 %v3805_v5, %v2736_v54  ;;  %v194_v60 = vsel %vm193_vm5, %v190_v46, %v2628_v9  ;;  %v195_v58 = vsel %vm193_vm5, %v188_v1, %v190_v46  ;;  %v201_v9 = vpop.permute.xlu0 %200  ;;  %v2903_v5 = vpop.permute.xlu1 %210 }
  0xf5   :  { %v3829_v10 = vcombine.high %v3823_v62, %v3823_v62  ;;  %v289_v43 = vmul.f32 %v2302_v3, %v195_v58  ;;  %v290_v32 = vmul.f32 %v2302_v3, %v194_v60  ;;  %v3830_v56 = vcombine.high %v3824_v24, %v3824_v24 }
  0xf6   :  { %v426_v25 = vmul.f32 %v2305_v0, %v195_v58  ;;  %v427_v1 = vmul.f32 %v2305_v0, %v194_v60  ;;  %v581_v18 = vmul.f32 %v3789_v45, %v195_v58  ;;  %v582_v3 = vmul.f32 %v3789_v45, %v194_v60 }
  0xf7   :  { %v281_v51 = vadd.f32 %v3829_v10, %v2679_v15  ;;  %v418_v54 = vadd.f32 %v3830_v56, %v2692_v4  ;;  %v3831_v15 = vcombine.high %v3825_v26, %v3825_v26  ;;  %v2914_v24 = vadd.f32 %v290_v32, %v282_v63 }
  0xf8   :  { %v3833_v57 = vcombine.high %v3826_v41, %v3826_v41  ;;  %v2922_v21 = vadd.f32 %v427_v1, %v419_v47  ;;  %v736_v26 = vmul.f32 %v3799_v6, %v195_v58  ;;  %v737_v45 = vmul.f32 %v3799_v6, %v194_v60  ;;  %v205_v32 = vpop.permute.xlu1 %204  ;;  %v3841_v1 = vld [vmem:[#allocation46_spill] sm:$0xff] }
  0xf9   :  { %v573_v62 = vadd.f32 %v3831_v15, %v2698_v39  ;;  %v2912_v13 = vadd.f32 %v289_v43, %v281_v51  ;;  %v2916_v4 = vadd.f32 %v426_v25, %v418_v54  ;;  %v2926_v39 = vadd.f32 %v582_v3, %v574_v30  ;;  %v203_v43 = vpop.permute.xlu0 %202  ;;  %v3838_v54 = vld [vmem:[#allocation40_spill] sm:$0xff]  ;;  %v3839_v25 = vld [vmem:[#allocation42_spill] sm:$0xff] }
  0xfa   :  { %v728_v0 = vadd.f32 %v3833_v57, %v3832_v12  ;;  %v3835_v63 = vcombine.high %v3827_v16, %v3827_v16  ;;  %v891_v17 = vmul.f32 %v3803_v61, %v195_v58  ;;  %v892_v41 = vmul.f32 %v3803_v61, %v194_v60  ;;  %v3844_v12 = vld [vmem:[#allocation34_spill] sm:$0xff] }
  0xfb   :  { %v2924_v46 = vadd.f32 %v581_v18, %v573_v62  ;;  %v3837_v19 = vcombine.high %v3828_v29, %v3828_v29  ;;  %v1046_v30 = vmul.f32 %v3807_v11, %v195_v58  ;;  %v1047_v6 = vmul.f32 %v3807_v11, %v194_v60  ;;  %v3843_v18 = vld [vmem:[#allocation49_spill] sm:$0xff] }
  0xfc   :  { %v883_v37 = vadd.f32 %v3835_v63, %v3834_v59  ;;  %v2936_v52 = vadd.f32 %v736_v26, %v728_v0  ;;  %v2944_v10 = vadd.f32 %v737_v45, %v729_v28  ;;  %v2948_v16 = vadd.f32 %v892_v41, %v884_v31  ;;  %v3840_v28 = vld [vmem:[#allocation44_spill] sm:$0xff]  ;;  %v3846_v59 = vld [vmem:[#allocation69_spill] sm:$0xff] }
  0xfd   :  { %v1038_v47 = vadd.f32 %v3837_v19, %v3836_v53  ;;  %v218_v61 = vsel %vm212_vm6, %v2903_v5, %v201_v9  ;;  %v2955_v29 = vadd.f32 %v1047_v6, %v1039_v14  ;;  %v3842_v31 = vld [vmem:[#allocation48_spill] sm:$0xff]  ;;  %v217_v14 = vsel %vm212_vm6, %v201_v9, %v203_v43  ;;  %v3848_v41 = vld [vmem:[#allocation21_spill] sm:$0xff]  ;;  %v3850_v19 = vld [vmem:[#allocation35_spill] sm:$0xff] }
  0xfe   :  { %v2946_v51 = vadd.f32 %v891_v17, %v883_v37  ;;  %v305_v58 = vmul.f32 %v3838_v54, %v218_v61  ;;  %v442_v11 = vmul.f32 %v3839_v25, %v218_v61  ;;  %v597_v60 = vmul.f32 %v3840_v28, %v218_v61  ;;  %v3845_v0 = vld [vmem:[#allocation68_spill] sm:$0xff]  ;;  %v3847_v37 = vld [vmem:[#allocation65_spill] sm:$0xff] }
  0xff   :  { %v2953_v56 = vadd.f32 %v1046_v30, %v1038_v47  ;;  %v752_v15 = vmul.f32 %v3841_v1, %v218_v61  ;;  %v907_v62 = vmul.f32 %v3842_v31, %v218_v61  ;;  %v1062_v3 = vmul.f32 %v3843_v18, %v218_v61  ;;  %v3852_v30 = vld [vmem:[#allocation41_spill] sm:$0xff]  ;;  %v3853_v61 = vld [vmem:[#allocation43_spill] sm:$0xff] }
 0x100   :  { %v311_v57 = vadd.f32 %v305_v58, %v3844_v12  ;;  %v448_v26 = vadd.f32 %v442_v11, %v3845_v0  ;;  %v216_v45 = vsel %vm212_vm6, %v203_v43, %v205_v32  ;;  %v603_v63 = vadd.f32 %v597_v60, %v3846_v59  ;;  %v3854_v12 = vld [vmem:[#allocation45_spill] sm:$0xff]  ;;  %v3856_v60 = vld [vmem:[#allocation47_spill] sm:$0xff] }
 0x101   :  { %v758_v17 = vadd.f32 %v752_v15, %v3847_v37  ;;  %v2972_v53 = vadd.f32 %v907_v62, %v3848_v41  ;;  %v2975_v47 = vadd.f32 %v1062_v3, %v3850_v19  ;;  %v300_v11 = vmul.f32 %v3838_v54, %v217_v14 }
 0x102   :  { %v319_v6 = vadd.f32 %v3852_v30, %v311_v57  ;;  %v456_v58 = vadd.f32 %v3853_v61, %v448_v26  ;;  %v437_v9 = vmul.f32 %v3839_v25, %v217_v14  ;;  %v2982_v43 = vadd.f32 %v3854_v12, %v603_v63 }
 0x103   :  { %3849 = vst [vmem:[#allocation66_spill] sm:$0xff] %v2972_v53  ;;  %3851 = vst [vmem:[#allocation22_spill] sm:$0xff] %v2975_v47  ;;  %v2985_v0 = vadd.f32 %v3856_v60, %v758_v17  ;;  %v592_v15 = vmul.f32 %v3840_v28, %v217_v14  ;;  %v747_v62 = vmul.f32 %v3841_v1, %v217_v14 }
 0x104   :  { %3855 = vst [vmem:[#allocation38_spill] sm:$0xff] %v2982_v43  ;;  %v325_v3 = vmul.f32 0.01, %v319_v6  ;;  %v462_v59 = vmul.f32 0.01, %v456_v58  ;;  %v306_v57 = vadd.f32 %v300_v11, %v2798_v49  ;;  %v443_v26 = vadd.f32 %v437_v9, %v2800_v8 }
 0x105   :  { %3857 = vst [vmem:[#allocation67_spill] sm:$0xff] %v2985_v0  ;;  %v2992_v37 = vmul.f32 0.01, %v2982_v43  ;;  %v598_v41 = vadd.f32 %v592_v15, %v2802_v34  ;;  %v753_v63 = vadd.f32 %v747_v62, %v2804_v55  ;;  %v902_v17 = vmul.f32 %v3842_v31, %v217_v14 }
 0x106   :  { %v2997_v19 = vmax.f32 %v319_v6, %v325_v3  ;;  %v2999_v47 = vmax.f32 %v456_v58, %v462_v59  ;;  %v314_v53 = vadd.f32 %v3852_v30, %v306_v57  ;;  %v451_v0 = vadd.f32 %v3853_v61, %v443_v26  ;;  %v209_v57 = vpop.permute.xlu1 %208 }
 0x107   :  { %3858 = vst [vmem:[#allocation23_spill] sm:$0xff] %v2992_v37  ;;  %v3004_v49 = vadd.f32 %v3854_v12, %v598_v41  ;;  %v3007_v8 = vadd.f32 %v3856_v60, %v753_v63  ;;  %v3010_v34 = vadd.f32 %v902_v17, %v2806_v48  ;;  %v1057_v55 = vmul.f32 %v3843_v18, %v217_v14  ;;  %v207_v48 = vpop.permute.xlu0 %206 }
 0x108   :  { %3859 = vst [vmem:[#allocation39_spill] sm:$0xff] %v2999_v47  ;;  %v320_v11 = vmul.f32 0.01, %v314_v53  ;;  %v457_v6 = vmul.f32 0.01, %v451_v0  ;;  %v301_v58 = vmul.f32 %v3838_v54, %v216_v45  ;;  %v438_v9 = vmul.f32 %v3839_v25, %v216_v45 }
 0x109   :  { %v3016_v15 = vmul.f32 0.01, %v3004_v49  ;;  %v3019_v62 = vadd.f32 %v1057_v55, %v2808_v44  ;;  %v593_v3 = vmul.f32 %v3840_v28, %v216_v45  ;;  %v748_v59 = vmul.f32 %v3841_v1, %v216_v45 }
 0x10a   :  { %v3023_v26 = vmax.f32 %v314_v53, %v320_v11  ;;  %v3025_v14 = vmax.f32 %v451_v0, %v457_v6  ;;  %v307_v41 = vadd.f32 %v301_v58, %v2810_v7  ;;  %v444_v63 = vadd.f32 %v438_v9, %v2812_v42 }
 0x10b   :  { %v599_v17 = vadd.f32 %v593_v3, %v2834_v40  ;;  %v754_v43 = vadd.f32 %v748_v59, %v2836_v2  ;;  %v903_v44 = vmul.f32 %v3842_v31, %v216_v45  ;;  %v1058_v55 = vmul.f32 %v3843_v18, %v216_v45 }
 0x10c   :  { %v315_v37 = vadd.f32 %v3852_v30, %v307_v41  ;;  %v452_v47 = vadd.f32 %v3853_v61, %v444_v63  ;;  %v215_v53 = vsel %vm212_vm6, %v205_v32, %v207_v48  ;;  %v3040_v7 = vsel %vm212_vm6, %v209_v57, %v2903_v5 }
 0x10d   :  { %v3043_v42 = vadd.f32 %v3854_v12, %v599_v17  ;;  %v3046_v40 = vadd.f32 %v3856_v60, %v754_v43  ;;  %v3049_v2 = vadd.f32 %v903_v44, %v2842_v23  ;;  %v3052_v45 = vadd.f32 %v1058_v55, %v2844_v36 }
 0x10e   :  { %v321_v0 = vmul.f32 0.01, %v315_v37  ;;  %v458_v11 = vmul.f32 0.01, %v452_v47  ;;  %v302_v32 = vmul.f32 %v3838_v54, %v215_v53  ;;  %v439_v6 = vmul.f32 %v3839_v25, %v215_v53 }
 0x10f   :  { %v3057_v5 = vmul.f32 0.01, %v3043_v42  ;;  %v594_v58 = vmul.f32 %v3840_v28, %v215_v53  ;;  %v749_v43 = vmul.f32 %v3841_v1, %v215_v53  ;;  %v904_v9 = vmul.f32 %v3842_v31, %v215_v53 }
 0x110   :  { %v3062_v23 = vmax.f32 %v315_v37, %v321_v0  ;;  %v3064_v3 = vmax.f32 %v452_v47, %v458_v11  ;;  %v308_v36 = vadd.f32 %v302_v32, %v2869_v38  ;;  %v445_v59 = vadd.f32 %v439_v6, %v2871_v33 }
 0x111   :  { %v600_v41 = vadd.f32 %v594_v58, %v2873_v50  ;;  %v755_v63 = vadd.f32 %v749_v43, %v2875_v20  ;;  %v3071_v17 = vadd.f32 %v904_v9, %v2877_v35  ;;  %v1059_v44 = vmul.f32 %v3843_v18, %v215_v53 }
 0x112   :  { %v316_v55 = vadd.f32 %v3852_v30, %v308_v36  ;;  %v453_v37 = vadd.f32 %v3853_v61, %v445_v59  ;;  %v214_v47 = vsel %vm212_vm6, %v207_v48, %v209_v57  ;;  %v304_v38 = vmul.f32 %v3838_v54, %v3040_v7 }
 0x113   :  { %v608_v33 = vadd.f32 %v3854_v12, %v600_v41  ;;  %v3082_v50 = vadd.f32 %v3856_v60, %v755_v63  ;;  %v3085_v20 = vadd.f32 %v1059_v44, %v2879_v22  ;;  %v303_v35 = vmul.f32 %v3838_v54, %v214_v47 }
 0x114   :  { %v322_v53 = vmul.f32 0.01, %v316_v55  ;;  %v459_v0 = vmul.f32 0.01, %v453_v37  ;;  %v310_v11 = vadd.f32 %v304_v38, %v2914_v24  ;;  %v440_v32 = vmul.f32 %v3839_v25, %v214_v47 }
 0x115   :  { %v614_v48 = vmul.f32 0.01, %v608_v33  ;;  %v309_v57 = vadd.f32 %v303_v35, %v2912_v13  ;;  %v441_v6 = vmul.f32 %v3839_v25, %v3040_v7  ;;  %v595_v58 = vmul.f32 %v3840_v28, %v214_v47 }
 0x116   :  { %v3094_v43 = vmax.f32 %v316_v55, %v322_v53  ;;  %v3096_v22 = vmax.f32 %v453_v37, %v459_v0  ;;  %v318_v54 = vadd.f32 %v3852_v30, %v310_v11  ;;  %v446_v9 = vadd.f32 %v440_v32, %v2916_v4 }
 0x117   :  { %v317_v24 = vadd.f32 %v3852_v30, %v309_v57  ;;  %v447_v36 = vadd.f32 %v441_v6, %v2922_v21  ;;  %v596_v13 = vmul.f32 %v3840_v28, %v3040_v7  ;;  %v601_v59 = vadd.f32 %v595_v58, %v2924_v46 }
 0x118   :  { %3860 = vst [vmem:[#allocation24_spill] sm:$0xff] %v3096_v22  ;;  %v324_v25 = vmul.f32 0.01, %v318_v54  ;;  %v454_v41 = vadd.f32 %v3853_v61, %v446_v9  ;;  %v750_v63 = vmul.f32 %v3841_v1, %v214_v47  ;;  %v751_v44 = vmul.f32 %v3841_v1, %v3040_v7  ;;  %v3862_v9 = vld [vmem:[#allocation51_spill] sm:$0xff] }
 0x119   :  { %v323_v55 = vmul.f32 0.01, %v317_v24  ;;  %v455_v4 = vadd.f32 %v3853_v61, %v447_v36  ;;  %v602_v30 = vadd.f32 %v596_v13, %v2926_v39  ;;  %v3112_v21 = vadd.f32 %v3854_v12, %v601_v59 }
 0x11a   :  { %v3114_v37 = vmax.f32 %v318_v54, %v324_v25  ;;  %v460_v28 = vmul.f32 0.01, %v454_v41  ;;  %v756_v46 = vadd.f32 %v750_v63, %v2936_v52  ;;  %v757_v38 = vadd.f32 %v751_v44, %v2944_v10  ;;  %v3864_v25 = vld [vmem:[#allocation53_spill] sm:$0xff] }
 0x11b   :  { %v3118_v35 = vmax.f32 %v317_v24, %v323_v55  ;;  %v461_v53 = vmul.f32 0.01, %v455_v4  ;;  %v3121_v1 = vadd.f32 %v3854_v12, %v602_v30  ;;  %v3124_v61 = vmul.f32 0.01, %v3112_v21 }
 0x11c   :  { %v3126_v39 = vmax.f32 %v454_v41, %v460_v28  ;;  %v3129_v0 = vadd.f32 %v3856_v60, %v756_v46  ;;  %v3132_v11 = vadd.f32 %v3856_v60, %v757_v38  ;;  %v905_v52 = vmul.f32 %v3842_v31, %v214_v47  ;;  %v3861_v60 = vld [vmem:[#allocation50_spill] sm:$0xff] }
 0x11d   :  { %v3135_v10 = vmax.f32 %v455_v4, %v461_v53  ;;  %v3138_v32 = vmul.f32 0.01, %v3121_v1  ;;  %v906_v12 = vmul.f32 %v3842_v31, %v3040_v7  ;;  %v1060_v57 = vmul.f32 %v3843_v18, %v214_v47  ;;  %v3863_v47 = vld [vmem:[#allocation52_spill] sm:$0xff]  ;;  %v3865_v41 = vld [vmem:[#allocation54_spill] sm:$0xff] }
 0x11e   :  { %v3144_v6 = vadd.f32 %v905_v52, %v2946_v51  ;;  %v1061_v58 = vmul.f32 %v3843_v18, %v3040_v7  ;;  %v335_v54 = vmul.f32 %v3861_v60, %v3062_v23  ;;  %v472_v24 = vmul.f32 %v3862_v9, %v3064_v3 }
 0x11f   :  { %v3153_v36 = vadd.f32 %v906_v12, %v2948_v16  ;;  %v3156_v13 = vadd.f32 %v1060_v57, %v2953_v56  ;;  %v3160_v31 = vmax.f32 %v3043_v42, %v3057_v5  ;;  %v768_v51 = vmul.f32 0.01, %v3046_v40  ;;  %v3871_v57 = vld [vmem:[#allocation58_spill] sm:$0xff] }
 0x120   :  { %v3164_v18 = vadd.f32 %v1061_v58, %v2955_v29  ;;  %v478_v7 = vadd.f32 %v472_v24, %v335_v54  ;;  %v917_v59 = vadd.f32 %v3863_v47, %v3049_v2  ;;  %v1072_v16 = vadd.f32 %v3864_v25, %v3052_v45  ;;  %v3867_v45 = vld [vmem:[#allocation55_spill] sm:$0xff]  ;;  %v3873_v24 = vld [vmem:[#allocation57_spill] sm:$0xff] }
 0x121   :  { %v627_v56 = vmul.f32 %v3865_v41, %v3160_v31  ;;  %v3173_v63 = vmax.f32 %v3046_v40, %v768_v51  ;;  %v336_v42 = vmul.f32 %v3861_v60, %v3094_v43  ;;  %v473_v29 = vmul.f32 %v3862_v9, %v3096_v22 }
 0x122   :  { %v923_v5 = vmul.f32 0.01, %v917_v59  ;;  %v1078_v44 = vmul.f32 0.01, %v1072_v16  ;;  %v3179_v55 = vmax.f32 %v608_v33, %v614_v48  ;;  %v769_v2 = vmul.f32 0.01, %v3082_v50 }
 0x123   :  { %3866 = vst [vmem:[#allocation25_spill] sm:$0xff] %v3173_v63  ;;  %v633_v4 = vadd.f32 %v627_v56, %v478_v7  ;;  %v782_v30 = vmul.f32 %v3867_v45, %v3173_v63  ;;  %v479_v28 = vadd.f32 %v473_v29, %v336_v42  ;;  %v918_v40 = vadd.f32 %v3863_v47, %v3071_v17  ;;  %v3872_v17 = vld [vmem:[#allocation56_spill] sm:$0xff]  ;;  %v3874_v56 = vld [vmem:[#allocation59_spill] sm:$0xff] }
 0x124   :  { %v3186_v46 = vmax.f32 %v917_v59, %v923_v5  ;;  %v3188_v38 = vmax.f32 %v1072_v16, %v1078_v44  ;;  %v628_v53 = vmul.f32 %v3865_v41, %v3179_v55  ;;  %v3193_v33 = vmax.f32 %v3082_v50, %v769_v2  ;;  %v3876_v2 = vld [vmem:[#allocation61_spill] sm:$0xff] }
 0x125   :  { %v788_v48 = vadd.f32 %v782_v30, %v633_v4  ;;  %v924_v52 = vmul.f32 0.01, %v918_v40  ;;  %v1073_v12 = vadd.f32 %v3864_v25, %v3085_v20  ;;  %v352_v58 = vmul.f32 %v3871_v57, %v3094_v43  ;;  %v3875_v20 = vld [vmem:[#allocation60_spill] sm:$0xff] }
 0x126   :  { %3868 = vst [vmem:[#allocation26_spill] sm:$0xff] %v3186_v46  ;;  %3869 = vst [vmem:[#allocation27_spill] sm:$0xff] %v3188_v38  ;;  %v937_v54 = vmul.f32 %v3872_v17, %v3186_v46  ;;  %v1092_v51 = vmul.f32 %v3873_v24, %v3188_v38  ;;  %v634_v7 = vadd.f32 %v628_v53, %v479_v28 }
 0x127   :  { %3870 = vst [vmem:[#allocation28_spill] sm:$0xff] %v3193_v33  ;;  %v783_v59 = vmul.f32 %v3867_v45, %v3193_v33  ;;  %v3205_v50 = vmax.f32 %v918_v40, %v924_v52  ;;  %v1079_v16 = vmul.f32 0.01, %v1073_v12  ;;  %v501_v42 = vmul.f32 %v3874_v56, %v3096_v22  ;;  %v3877_v52 = vld [vmem:[#allocation62_spill] sm:$0xff] }
 0x128   :  { %v656_v29 = vmul.f32 %v3875_v20, %v3179_v55  ;;  %v943_v5 = vadd.f32 %v937_v54, %v788_v48  ;;  %v811_v4 = vmul.f32 %v3876_v2, %v3193_v33  ;;  %v351_v30 = vmul.f32 %v3871_v57, %v3062_v23 }
 0x129   :  { %v789_v44 = vadd.f32 %v783_v59, %v634_v7  ;;  %v938_v28 = vmul.f32 %v3872_v17, %v3205_v50  ;;  %v3217_v40 = vmax.f32 %v1073_v12, %v1079_v16  ;;  %v507_v53 = vadd.f32 %v501_v42, %v352_v58  ;;  %v3878_v58 = vld [vmem:[#allocation63_spill] sm:$0xff] }
 0x12a   :  { %v966_v27 = vmul.f32 %v3877_v52, %v3205_v50  ;;  %v1098_v22 = vadd.f32 %v1092_v51, %v943_v5  ;;  %v500_v48 = vmul.f32 %v3874_v56, %v3064_v3  ;;  %v655_v54 = vmul.f32 %v3875_v20, %v3160_v31 }
 0x12b   :  { %v810_v7 = vmul.f32 %v3876_v2, %v3173_v63  ;;  %v944_v59 = vadd.f32 %v938_v28, %v789_v44  ;;  %v1093_v33 = vmul.f32 %v3873_v24, %v3217_v40  ;;  %v662_v12 = vadd.f32 %v656_v29, %v507_v53 }
 0x12c   :  { %v1121_v16 = vmul.f32 %v3878_v58, %v3217_v40  ;;  %1139 = vrot.lane.b32.xlu1 %v1098_v22, %s3879_s6  ;;  %v506_v51 = vadd.f32 %v500_v48, %v351_v30  ;;  %v965_v42 = vmul.f32 %v3877_v52, %v3186_v46  ;;  %v1120_v5 = vmul.f32 %v3878_v58, %v3188_v38 }
 0x12d   :  { %v350_v63 = vmul.f32 %v3871_v57, %v3023_v26  ;;  %v1099_v44 = vadd.f32 %v1093_v33, %v944_v59  ;;  %v817_v28 = vadd.f32 %v811_v4, %v662_v12  ;;  %v499_v29 = vmul.f32 %v3874_v56, %v3025_v14 }
 0x12e   :  { %v3242_v53 = vmax.f32 %v3004_v49, %v3016_v15  ;;  %v661_v22 = vadd.f32 %v655_v54, %v506_v51  ;;  %v767_v30 = vmul.f32 0.01, %v3007_v8  ;;  %v916_v48 = vadd.f32 %v3863_v47, %v3010_v34 }
 0x12f   :  { %v1071_v38 = vadd.f32 %v3864_v25, %v3019_v62  ;;  %1141 = vrot.lane.b32.xlu0 %v1099_v44, %s3879_s6  ;;  %v972_v33 = vadd.f32 %v966_v27, %v817_v28  ;;  %v505_v4 = vadd.f32 %v499_v29, %v350_v63  ;;  %v334_v49 = vmul.f32 %v3861_v60, %v3023_v26 }
 0x130   :  { %v654_v59 = vmul.f32 %v3875_v20, %v3242_v53  ;;  %v816_v15 = vadd.f32 %v810_v7, %v661_v22  ;;  %v3255_v54 = vmax.f32 %v3007_v8, %v767_v30  ;;  %v922_v12 = vmul.f32 0.01, %v916_v48 }
 0x131   :  { %v1077_v51 = vmul.f32 0.01, %v1071_v38  ;;  %v1127_v34 = vadd.f32 %v1121_v16, %v972_v33  ;;  %v471_v62 = vmul.f32 %v3862_v9, %v3025_v14  ;;  %v626_v27 = vmul.f32 %v3865_v41, %v3242_v53 }
 0x132   :  { %v660_v46 = vadd.f32 %v654_v59, %v505_v4  ;;  %v971_v63 = vadd.f32 %v965_v42, %v816_v15  ;;  %v809_v44 = vmul.f32 %v3876_v2, %v3255_v54  ;;  %v3263_v28 = vmax.f32 %v916_v48, %v922_v12 }
 0x133   :  { %v3265_v7 = vmax.f32 %v1071_v38, %v1077_v51  ;;  %1171 = vrot.lane.b32.xlu1 %v1127_v34, %s3880_s7  ;;  %v477_v8 = vadd.f32 %v471_v62, %v334_v49  ;;  %v781_v16 = vmul.f32 %v3867_v45, %v3255_v54  ;;  %v337_v29 = vmul.f32 %v3861_v60, %v3118_v35 }
 0x134   :  { %v474_v22 = vmul.f32 %v3862_v9, %v3126_v39  ;;  %v1126_v42 = vadd.f32 %v1120_v5, %v971_v63  ;;  %v815_v30 = vadd.f32 %v809_v44, %v660_v46  ;;  %v964_v48 = vmul.f32 %v3877_v52, %v3263_v28 }
 0x135   :  { %v1119_v38 = vmul.f32 %v3878_v58, %v3265_v7  ;;  %v632_v33 = vadd.f32 %v626_v27, %v477_v8  ;;  %v936_v4 = vmul.f32 %v3872_v17, %v3263_v28  ;;  %v1091_v59 = vmul.f32 %v3873_v24, %v3265_v7  ;;  %v3881_v27 = vld [vmem:[#allocation39_spill] sm:$0xff] }
 0x136   :  { %v480_v49 = vadd.f32 %v474_v22, %v337_v29  ;;  %1169 = vrot.lane.b32.xlu0 %v1126_v42, %s3880_s7  ;;  %v970_v15 = vadd.f32 %v964_v48, %v815_v30  ;;  %v3285_v46 = vmax.f32 %v3112_v21, %v3124_v61  ;;  %v770_v5 = vmul.f32 0.01, %v3129_v0  ;;  %v3882_v22 = vld [vmem:[#allocation23_spill] sm:$0xff]  ;;  %v3883_v42 = vld [vmem:[#allocation38_spill] sm:$0xff]  ;;  %v1281_v30 = vld [vmem:[#allocation12 + $0xf8] sm:$0xff] }
 0x137   :  { %v919_v12 = vadd.f32 %v3863_v47, %v3144_v6  ;;  %v787_v51 = vadd.f32 %v781_v16, %v632_v33  ;;  %v1074_v34 = vadd.f32 %v3864_v25, %v3156_v13  ;;  %v339_v62 = vmul.f32 %v3861_v60, %v2997_v19  ;;  %1765 = vmatprep.subr.mxu0 %v1281_v30 }
 0x138   :  { %v476_v63 = vmul.f32 %v3862_v9, %v3881_v27  ;;  %v1125_v44 = vadd.f32 %v1119_v38, %v970_v15  ;;  %v629_v21 = vmul.f32 %v3865_v41, %v3285_v46  ;;  %v3299_v61 = vmax.f32 %v3129_v0, %v770_v5  ;;  %v3884_v15 = vld [vmem:[#allocation67_spill] sm:$0xff] }
 0x139   :  { %v925_v8 = vmul.f32 0.01, %v919_v12  ;;  %v942_v29 = vadd.f32 %v936_v4, %v787_v51  ;;  %v1080_v6 = vmul.f32 0.01, %v1074_v34  ;;  %v3303_v13 = vmax.f32 %v3883_v42, %v3882_v22 }
 0x13a   :  { %v482_v16 = vadd.f32 %v476_v63, %v339_v62  ;;  %1167 = vrot.lane.b32.xlu1 %v1125_v44, %s3880_s7  ;;  %v635_v48 = vadd.f32 %v629_v21, %v480_v49  ;;  %v784_v38 = vmul.f32 %v3867_v45, %v3299_v61  ;;  %v772_v0 = vmul.f32 0.01, %v3884_v15  ;;  %v3885_v62 = vld [vmem:[#allocation66_spill] sm:$0xff] }
 0x13b   :  { %v3308_v33 = vmax.f32 %v919_v12, %v925_v8  ;;  %v1097_v5 = vadd.f32 %v1091_v59, %v942_v29  ;;  %v3311_v4 = vmax.f32 %v1074_v34, %v1080_v6  ;;  %v631_v51 = vmul.f32 %v3865_v41, %v3303_v13  ;;  %v3886_v12 = vld [vmem:[#allocation22_spill] sm:$0xff] }
 0x13c   :  { %v921_v63 = vadd.f32 %v3863_v47, %v3885_v62  ;;  %v790_v22 = vadd.f32 %v784_v38, %v635_v48  ;;  %v3320_v44 = vmax.f32 %v3884_v15, %v772_v0  ;;  %v1076_v21 = vadd.f32 %v3864_v25, %v3886_v12 }
 0x13d   :  { %v939_v49 = vmul.f32 %v3872_v17, %v3308_v33  ;;  %1137 = vrot.lane.b32.xlu0 %v1097_v5, %s3879_s6  ;;  %v1094_v59 = vmul.f32 %v3873_v24, %v3311_v4  ;;  %v637_v34 = vadd.f32 %v631_v51, %v482_v16  ;;  %v354_v29 = vmul.f32 %v3871_v57, %v3114_v37 }
 0x13e   :  { %v927_v8 = vmul.f32 0.01, %v921_v63  ;;  %v786_v42 = vmul.f32 %v3867_v45, %v3320_v44  ;;  %v1082_v30 = vmul.f32 0.01, %v1076_v21  ;;  %v503_v48 = vmul.f32 %v3874_v56, %v3135_v10 }
 0x13f   :  { %v945_v6 = vadd.f32 %v939_v49, %v790_v22  ;;  %v3337_v15 = vmax.f32 %v3121_v1, %v3138_v32  ;;  %v771_v16 = vmul.f32 0.01, %v3132_v11  ;;  %v920_v0 = vadd.f32 %v3863_v47, %v3153_v36 }
 0x140   :  { %v3333_v38 = vmax.f32 %v921_v63, %v927_v8  ;;  %v792_v51 = vadd.f32 %v786_v42, %v637_v34  ;;  %v3342_v62 = vmax.f32 %v1076_v21, %v1082_v30  ;;  %v509_v22 = vadd.f32 %v503_v48, %v354_v29  ;;  %v3887_v29 = vld [vmem:[#allocation64_spill] sm:$0xff] }
 0x141   :  { %v1100_v5 = vadd.f32 %v1094_v59, %v945_v6  ;;  %v658_v63 = vmul.f32 %v3875_v20, %v3337_v15  ;;  %v3349_v12 = vmax.f32 %v3132_v11, %v771_v16  ;;  %v926_v1 = vmul.f32 0.01, %v920_v0 }
 0x142   :  { %v941_v49 = vmul.f32 %v3872_v17, %v3333_v38  ;;  %v1096_v32 = vmul.f32 %v3873_v24, %v3342_v62  ;;  %v1075_v36 = vadd.f32 %v3864_v25, %v3164_v18  ;;  %v353_v47 = vmul.f32 %v3871_v57, %v3118_v35 }
 0x143   :  { %1143 = vrot.lane.b32.xlu1 %v1100_v5, %s3879_s6  ;;  %v502_v21 = vmul.f32 %v3874_v56, %v3126_v39  ;;  %v664_v34 = vadd.f32 %v658_v63, %v509_v22  ;;  %v813_v11 = vmul.f32 %v3876_v2, %v3349_v12  ;;  %v3362_v8 = vmax.f32 %v920_v0, %v926_v1 }
 0x144   :  { %v947_v59 = vadd.f32 %v941_v49, %v792_v51  ;;  %vm104_vm7 = vcmp.lt.s32.totalorder %v3887_v29, 671  ;;  %v1081_v6 = vmul.f32 0.01, %v1075_v36  ;;  %v657_v18 = vmul.f32 %v3875_v20, %v3285_v46 }
 0x145   :  { %v508_v42 = vadd.f32 %v502_v21, %v353_v47  ;;  %v819_v30 = vadd.f32 %v813_v11, %v664_v34  ;;  %v968_v48 = vmul.f32 %v3877_v52, %v3362_v8  ;;  %v812_v5 = vmul.f32 %v3876_v2, %v3299_v61  ;;  %v1280_v47 = vld [vmem:[#allocation12 + $0xf0] sm:$0xff] }
 0x146   :  { %v1102_v25 = vadd.f32 %v1096_v32, %v947_v59  ;;  %v3373_v16 = vmax.f32 %v1075_v36, %v1081_v6  ;;  %v355_v51 = vmul.f32 %v3871_v57, %v2997_v19  ;;  %v504_v63 = vmul.f32 %v3874_v56, %v3881_v27  ;;  %v1265_v36 = vld [vmem:[#allocation12 + $0x78] sm:$0xff]  ;;  %v1264_v21 = vld [vmem:[#allocation12 + $0x70] sm:$0xff] }
 0x147   :  { %v663_v0 = vadd.f32 %v657_v18, %v508_v42  ;;  %v974_v49 = vadd.f32 %v968_v48, %v819_v30  ;;  %v967_v57 = vmul.f32 %v3877_v52, %v3308_v33  ;;  %v659_v56 = vmul.f32 %v3875_v20, %v3303_v13  ;;  %1766 = vmatpush3.msra.mxu0 %v1265_v36  ;;  %v1313_v6 = vld [vmem:[#allocation12 + $0x1f8] sm:$0xff]  ;;  %v1279_v20 = vld [vmem:[#allocation12 + $0xe8] sm:$0xff] }
 0x148   :  { %v1136_v22 = vsel %vm104_vm7, %v1102_v25, 0.0  ;;  %v1123_v1 = vmul.f32 %v3878_v58, %v3373_v16  ;;  %v510_v59 = vadd.f32 %v504_v63, %v355_v51  ;;  %v338_v34 = vmul.f32 %v3861_v60, %v3114_v37  ;;  %1767 = vmatprep.subr.mxu0 %v1280_v47  ;;  %1800 = vmatprep.subr.mxu1 %v1313_v6  ;;  %v1312_v6 = vld [vmem:[#allocation12 + $0x1f0] sm:$0xff] }
 0x149   :  { %1147 = vrot.lane.b32.xlu0 %v1136_v22, %s3879_s6  ;;  %v818_v32 = vadd.f32 %v812_v5, %v663_v0  ;;  %v475_v11 = vmul.f32 %v3862_v9, %v3135_v10  ;;  %v1122_v25 = vmul.f32 %v3878_v58, %v3311_v4  ;;  %v814_v30 = vmul.f32 %v3876_v2, %v3320_v44  ;;  %v1297_v5 = vld [vmem:[#allocation12 + $0x178] sm:$0xff] }
 0x14a   :  { %v1129_v42 = vadd.f32 %v1123_v1, %v974_v49  ;;  %v665_v60 = vadd.f32 %v659_v56, %v510_v59  ;;  %v969_v9 = vmul.f32 %v3877_v52, %v3333_v38  ;;  %v630_v0 = vmul.f32 %v3865_v41, %v3337_v15  ;;  %1768 = vmatpush3.msra.mxu0 %v1264_v21  ;;  %v3888_v1 = vld [vmem:[#allocation24_spill] sm:$0xff] }
 0x14b   :  { %v973_v18 = vadd.f32 %v967_v57, %v818_v32  ;;  %v481_v48 = vadd.f32 %v475_v11, %v338_v34  ;;  %v785_v2 = vmul.f32 %v3867_v45, %v3349_v12  ;;  %v3414_v22 = vstv %s3364_s8  ;;  %1769 = vmatprep.subr.mxu0 %v1279_v20  ;;  %1801 = vmatpush3.msra.mxu1 %v1297_v5  ;;  %v3889_v20 = vld [vmem:[#allocation28_spill] sm:$0xff] }
 0x14c   :  { %1175 = vrot.lane.b32.xlu1 %v1129_v42, %s3880_s7  ;;  %v3417_v49 = vstv %s3369_s9  ;;  %v820_v52 = vadd.f32 %v814_v30, %v665_v60  ;;  %v344_v41 = vmul.f32 %v3414_v22, %v3094_v43  ;;  %v1124_v45 = vmul.f32 %v3878_v58, %v3342_v62  ;;  %v1263_v58 = vld [vmem:[#allocation12 + $0x68] sm:$0xff]  ;;  %v1278_v42 = vld [vmem:[#allocation12 + $0xe0] sm:$0xff]  ;;  %1802 = vmatprep.subr.mxu1 %v1312_v6 }
 0x14d   :  { %v1128_v51 = vadd.f32 %v1122_v25, %v973_v18  ;;  %v636_v63 = vadd.f32 %v630_v0, %v481_v48  ;;  %v487_v32 = vmul.f32 %v3417_v49, %v3888_v1  ;;  %v940_v57 = vmul.f32 %v3872_v17, %v3362_v8  ;;  %1770 = vmatpush3.msra.mxu0 %v1263_v58  ;;  %v1311_v1 = vld [vmem:[#allocation12 + $0x1e8] sm:$0xff] }
 0x14e   :  { %v1095_v36 = vmul.f32 %v3873_v24, %v3373_v16  ;;  %v3431_v47 = vstv %s3379_s4  ;;  %v975_v21 = vadd.f32 %v969_v9, %v820_v52  ;;  %v3436_v34 = vstv %s3385_s11  ;;  %1771 = vmatprep.subr.mxu0 %v1278_v42  ;;  %v1262_v52 = vld [vmem:[#allocation12 + $0x60] sm:$0xff]  ;;  %v1261_v42 = vld [vmem:[#allocation12 + $0x58] sm:$0xff] }
 0x14f   :  { %1173 = vrot.lane.b32.xlu0 %v1128_v51, %s3880_s7  ;;  %v791_v43 = vadd.f32 %v785_v2, %v636_v63  ;;  %v493_v59 = vadd.f32 %v487_v32, %v344_v41  ;;  %v642_v56 = vmul.f32 %v3431_v47, %v3179_v55  ;;  %v3439_v11 = vstv %s3392_s28  ;;  %v1296_v55 = vld [vmem:[#allocation12 + $0x170] sm:$0xff]  ;;  %v3890_v63 = vld [vmem:[#allocation25_spill] sm:$0xff]  ;;  %1772 = vmatpush3.msra.mxu0 %v1262_v52 }
 0x150   :  { %v343_v17 = vmul.f32 %v3414_v22, %v3062_v23  ;;  %v486_v24 = vmul.f32 %v3417_v49, %v3064_v3  ;;  %v1130_v18 = vadd.f32 %v1124_v45, %v975_v21  ;;  %v797_v60 = vmul.f32 %v3436_v34, %v3889_v20  ;;  %1803 = vmatpush3.msra.mxu1 %v1296_v55  ;;  %v1293_v52 = vld [vmem:[#allocation12 + $0x158] sm:$0xff] }
 0x151   :  { %v946_v25 = vadd.f32 %v940_v57, %v791_v43  ;;  %v648_v30 = vadd.f32 %v642_v56, %v493_v59  ;;  %v952_v9 = vmul.f32 %v3439_v11, %v3205_v50  ;;  %v3450_v48 = vstv %s3404_s29  ;;  %v3892_v57 = vld [vmem:[#allocation27_spill] sm:$0xff]  ;;  %v1277_v43 = vld [vmem:[#allocation12 + $0xd8] sm:$0xff]  ;;  %1804 = vmatprep.subr.mxu1 %v1311_v1 }
 0x152   :  { %v492_v23 = vadd.f32 %v486_v24, %v343_v17  ;;  %v641_v3 = vmul.f32 %v3431_v47, %v3160_v31  ;;  %v1166_v0 = vsel %vm104_vm7, %v1130_v18, 0.0  ;;  %v1107_v2 = vmul.f32 %v3450_v48, %v3217_v40  ;;  %v3891_v40 = vld [vmem:[#allocation26_spill] sm:$0xff]  ;;  %1773 = vmatprep.subr.mxu0 %v1277_v43  ;;  %v1292_v1 = vld [vmem:[#allocation12 + $0x150] sm:$0xff] }
 0x153   :  { %v1101_v5 = vadd.f32 %v1095_v36, %v946_v25  ;;  %v803_v51 = vadd.f32 %v797_v60, %v648_v30  ;;  %1177 = vrot.lane.b32.xlu1 %v1166_v0, %s3880_s7  ;;  %v796_v41 = vmul.f32 %v3436_v34, %v3890_v63  ;;  %v345_v31 = vmul.f32 %v3414_v22, %v3118_v35  ;;  %v1295_v17 = vld [vmem:[#allocation12 + $0x168] sm:$0xff]  ;;  %v1310_v30 = vld [vmem:[#allocation12 + $0x1e0] sm:$0xff]  ;;  %v1276_v60 = vld [vmem:[#allocation12 + $0xd0] sm:$0xff] }
 0x154   :  { %v647_v50 = vadd.f32 %v641_v3, %v492_v23  ;;  %v488_v29 = vmul.f32 %v3417_v49, %v3126_v39  ;;  %v951_v45 = vmul.f32 %v3439_v11, %v3891_v40  ;;  %v1106_v36 = vmul.f32 %v3450_v48, %v3892_v57  ;;  %1805 = vmatpush3.msra.mxu1 %v1295_v17  ;;  %v1294_v3 = vld [vmem:[#allocation12 + $0x160] sm:$0xff]  ;;  %v1256_v17 = vld [vmem:[#allocation12 + $0x30] sm:$0xff] }
 0x155   :  { %1145 = vrot.lane.b32.xlu0 %v1101_v5, %s3879_s6  ;;  %v958_v32 = vadd.f32 %v952_v9, %v803_v51  ;;  %v643_v21 = vmul.f32 %v3431_v47, %v3285_v46  ;;  %v342_v35 = vmul.f32 %v3414_v22, %v3023_v26  ;;  %v485_v39 = vmul.f32 %v3417_v49, %v3025_v14 }
 0x156   :  { %v802_v59 = vadd.f32 %v796_v41, %v647_v50  ;;  %v494_v56 = vadd.f32 %v488_v29, %v345_v31  ;;  %v798_v58 = vmul.f32 %v3436_v34, %v3299_v61  ;;  %v953_v6 = vmul.f32 %v3439_v11, %v3308_v33  ;;  %1774 = vmatpush3.msra.mxu0 %v1261_v42  ;;  %v1308_v41 = vld [vmem:[#allocation12 + $0x1d0] sm:$0xff]  ;;  %v1274_v29 = vld [vmem:[#allocation12 + $0xc0] sm:$0xff] }
 0x157   :  { %v3476_v24 = vadd.f32 %v1107_v2, %v958_v32  ;;  %v1108_v46 = vmul.f32 %v3450_v48, %v3311_v4  ;;  %v491_v25 = vadd.f32 %v485_v39, %v342_v35  ;;  %v640_v14 = vmul.f32 %v3431_v47, %v3242_v53  ;;  %1806 = vmatprep.subr.mxu1 %v1310_v30  ;;  %v1275_v2 = vld [vmem:[#allocation12 + $0xc8] sm:$0xff]  ;;  %v1290_v35 = vld [vmem:[#allocation12 + $0x140] sm:$0xff] }
 0x158   :  { %v957_v18 = vadd.f32 %v951_v45, %v802_v59  ;;  %v649_v26 = vadd.f32 %v643_v21, %v494_v56  ;;  %v346_v61 = vmul.f32 %v3414_v22, %v3114_v37  ;;  %v347_v33 = vmul.f32 %v3414_v22, %v2997_v19  ;;  %v1309_v22 = vld [vmem:[#allocation12 + $0x1d8] sm:$0xff]  ;;  %1775 = vmatprep.subr.mxu0 %v1276_v60  ;;  %v1272_v56 = vld [vmem:[#allocation12 + $0xb0] sm:$0xff]  ;;  %v1270_v42 = vld [vmem:[#allocation12 + $0xa0] sm:$0xff] }
 0x159   :  { %v489_v4 = vmul.f32 %v3417_v49, %v3135_v10  ;;  %v490_v20 = vmul.f32 %v3417_v49, %v3881_v27  ;;  %v646_v53 = vadd.f32 %v640_v14, %v491_v25  ;;  %v795_v23 = vmul.f32 %v3436_v34, %v3255_v54  ;;  %v1260_v27 = vld [vmem:[#allocation12 + $0x50] sm:$0xff]  ;;  %1807 = vmatpush3.msra.mxu1 %v1294_v3  ;;  %v1303_v25 = vld [vmem:[#allocation12 + $0x1a8] sm:$0xff]  ;;  %v1269_v14 = vld [vmem:[#allocation12 + $0x98] sm:$0xff] }
 0x15a   :  { %v3494_v55 = vadd.f32 %v1106_v36, %v957_v18  ;;  %v804_v9 = vadd.f32 %v798_v58, %v649_v26  ;;  %v644_v19 = vmul.f32 %v3431_v47, %v3337_v15  ;;  %v645_v10 = vmul.f32 %v3431_v47, %v3303_v13  ;;  %v1259_v47 = vld [vmem:[#allocation12 + $0x48] sm:$0xff]  ;;  %1776 = vmatpush3.msra.mxu0 %v1260_v27  ;;  %v1305_v58 = vld [vmem:[#allocation12 + $0x1b8] sm:$0xff]  ;;  %v1288_v18 = vld [vmem:[#allocation12 + $0x130] sm:$0xff] }
 0x15b   :  { %v495_v37 = vadd.f32 %v489_v4, %v346_v61  ;;  %v496_v0 = vadd.f32 %v490_v20, %v347_v33  ;;  %v801_v5 = vadd.f32 %v795_v23, %v646_v53  ;;  %v950_v51 = vmul.f32 %v3439_v11, %v3263_v28  ;;  %1808 = vmatprep.subr.mxu1 %v1309_v22  ;;  %v1291_v36 = vld [vmem:[#allocation12 + $0x148] sm:$0xff]  ;;  %v1254_v26 = vld [vmem:[#allocation12 + $0x20] sm:$0xff]  ;;  %v1253_v61 = vld [vmem:[#allocation12 + $0x18] sm:$0xff] }
 0x15c   :  { %v959_v49 = vadd.f32 %v953_v6, %v804_v9  ;;  %v1105_v54 = vmul.f32 %v3450_v48, %v3265_v7  ;;  %v799_v15 = vmul.f32 %v3436_v34, %v3349_v12  ;;  %v800_v13 = vmul.f32 %v3436_v34, %v3320_v44  ;;  %1777 = vmatprep.subr.mxu0 %v1275_v2  ;;  %v1258_v44 = vld [vmem:[#allocation12 + $0x40] sm:$0xff]  ;;  %v1307_v34 = vld [vmem:[#allocation12 + $0x1c8] sm:$0xff]  ;;  %v1268_v4 = vld [vmem:[#allocation12 + $0x90] sm:$0xff] }
 0x15d   :  { %v650_v50 = vadd.f32 %v644_v19, %v495_v37  ;;  %v651_v63 = vadd.f32 %v645_v10, %v496_v0  ;;  %v956_v28 = vadd.f32 %v950_v51, %v801_v5  ;;  %v954_v7 = vmul.f32 %v3439_v11, %v3362_v8  ;;  %1809 = vmatpush3.msra.mxu1 %v1293_v52  ;;  %v1273_v8 = vld [vmem:[#allocation12 + $0xb8] sm:$0xff]  ;;  %v1271_v6 = vld [vmem:[#allocation12 + $0xa8] sm:$0xff]  ;;  %v1302_v33 = vld [vmem:[#allocation12 + $0x1a0] sm:$0xff] }
 0x15e   :  { %v3510_v31 = vadd.f32 %v1108_v46, %v959_v49  ;;  %v955_v12 = vmul.f32 %v3439_v11, %v3333_v38  ;;  %v1109_v57 = vmul.f32 %v3450_v48, %v3373_v16  ;;  %1778 = vmatpush3.msra.mxu0 %v1259_v47  ;;  %1810 = vmatprep.subr.mxu1 %v1308_v41  ;;  %v1257_v38 = vld [vmem:[#allocation12 + $0x38] sm:$0xff]  ;;  %v1306_v11 = vld [vmem:[#allocation12 + $0x1c0] sm:$0xff]  ;;  %v1304_v46 = vld [vmem:[#allocation12 + $0x1b0] sm:$0xff] }
 0x15f   :  { %v805_v32 = vadd.f32 %v799_v15, %v650_v50  ;;  %v806_v40 = vadd.f32 %v800_v13, %v651_v63  ;;  %v3516_v45 = vadd.f32 %v1105_v54, %v956_v28  ;;  %v1110_v59 = vmul.f32 %v3450_v48, %v3342_v62  ;;  %1779 = vmatprep.subr.mxu0 %v1274_v29  ;;  %v1289_v62 = vld [vmem:[#allocation12 + $0x138] sm:$0xff]  ;;  %v1255_v48 = vld [vmem:[#allocation12 + $0x28] sm:$0xff]  ;;  %v1286_v20 = vld [vmem:[#allocation12 + $0x120] sm:$0xff] }
 0x160   :  { %1811 = vmatpush3.msra.mxu1 %v1292_v1  ;;  %1780 = vmatpush3.msra.mxu0 %v1258_v44  ;;  %v1287_v30 = vld [vmem:[#allocation12 + $0x128] sm:$0xff]  ;;  %v1252_v60 = vld [vmem:[#allocation12 + $0x10] sm:$0xff]  ;;  %v1301_v9 = vld [vmem:[#allocation12 + $0x198] sm:$0xff]  ;;  %v3893_v54 = vmov 0.0  }
 0x161   :  { %v960_v21 = vadd.f32 %v954_v7, %v805_v32  ;;  %v961_v43 = vadd.f32 %v955_v12, %v806_v40  ;;  %1812 = vmatprep.subr.mxu1 %v1307_v34  ;;  %1781 = vmatprep.subr.mxu0 %v1273_v8  ;;  %v1267_v53 = vld [vmem:[#allocation12 + $0x88] sm:$0xff]  ;;  %v1285_v23 = vld [vmem:[#allocation12 + $0x118] sm:$0xff]  ;;  %v1300_v37 = vld [vmem:[#allocation12 + $0x190] sm:$0xff]  ;;  %v1192_v32 = vstv %s3640_s3 }
 0x162   :  { %1813 = vmatpush3.msra.mxu1 %v1291_v36  ;;  %1782 = vmatpush3.msra.mxu0 %v1257_v38  ;;  %v1251_v3 = vld [vmem:[#allocation12 + $0x8] sm:$0xff]  ;;  %v1266_v0 = vld [vmem:[#allocation12 + $0x80] sm:$0xff]  ;;  %v1284_v19 = vld [vmem:[#allocation12 + $0x110] sm:$0xff] }
 0x163   :  { %v3522_v39 = vadd.f32 %v1109_v57, %v960_v21  ;;  %v3524_v16 = vadd.f32 %v1110_v59, %v961_v43  ;;  %1814 = vmatprep.subr.mxu1 %v1306_v11  ;;  %1783 = vmatprep.subr.mxu0 %v1272_v56  ;;  %v1250_v10 = vld [vmem:[#allocation12] sm:$0xff]  ;;  %v1299_v27 = vld [vmem:[#allocation12 + $0x188] sm:$0xff]  ;;  %v1345_v49 = vld [vmem:[#allocation12 + $0x2f8] sm:$0xff] }
 0x164   :  { %1815 = vmatpush3.msra.mxu1 %v1290_v35  ;;  %1784 = vmatpush3.msra.mxu0 %v1256_v17  ;;  %v1283_v22 = vld [vmem:[#allocation12 + $0x108] sm:$0xff]  ;;  %v1298_v5 = vld [vmem:[#allocation12 + $0x180] sm:$0xff] }
 0x165   :  { %1816 = vmatprep.subr.mxu1 %v1305_v58  ;;  %1785 = vmatprep.subr.mxu0 %v1271_v6  ;;  %v1282_v51 = vld [vmem:[#allocation12 + $0x100] sm:$0xff] }
 0x166   :  { %1817 = vmatpush3.msra.mxu1 %v1289_v62  ;;  %1786 = vmatpush3.msra.mxu0 %v1255_v48 }
 0x167   :  { %1818 = vmatprep.subr.mxu1 %v1304_v46  ;;  %1787 = vmatprep.subr.mxu0 %v1270_v42 }
 0x168   :  { %1819 = vmatpush3.msra.mxu1 %v1288_v18  ;;  %1788 = vmatpush3.msra.mxu0 %v1254_v26 }
 0x169   :  { %1820 = vmatprep.subr.mxu1 %v1303_v25  ;;  %1789 = vmatprep.subr.mxu0 %v1269_v14 }
 0x16a   :  { %1821 = vmatpush3.msra.mxu1 %v1287_v30  ;;  %1790 = vmatpush3.msra.mxu0 %v1253_v61 }
 0x16b   :  { %1822 = vmatprep.subr.mxu1 %v1302_v33  ;;  %1791 = vmatprep.subr.mxu0 %v1268_v4 }
 0x16c   :  { %1823 = vmatpush3.msra.mxu1 %v1286_v20  ;;  %1792 = vmatpush3.msra.mxu0 %v1252_v60 }
 0x16d   :  { %1824 = vmatprep.subr.mxu1 %v1301_v9  ;;  %1793 = vmatprep.subr.mxu0 %v1267_v53 }
 0x16e   :  { %1825 = vmatpush3.msra.mxu1 %v1285_v23  ;;  %1794 = vmatpush3.msra.mxu0 %v1251_v3  ;;  %v3895_v3 = vld [vmem:[#allocation18_spill] sm:$0xff] }
 0x16f   :  { %1826 = vmatprep.subr.mxu1 %v1300_v37  ;;  %1795 = vmatprep.subr.mxu0 %v1266_v0 }
 0x170   :  { %1827 = vmatpush3.msra.mxu1 %v1284_v19  ;;  %1796 = vmatpush3.msra.mxu0 %v1250_v10 }
 0x171   :  { %1828 = vmatprep.subr.mxu1 %v1299_v27  ;;  %1835 = vmatprep.subr.mxu0 %v1345_v49 }
 0x172   :  { %1829 = vmatpush3.msra.mxu1 %v1283_v22 }
 0x173   :  { %1830 = vmatprep.subr.mxu1 %v1298_v5 }
 0x174   :  { %1831 = vmatpush3.msra.mxu1 %v1282_v51 }
 0x175   :  { %1887 = vmatprep.subr.mxu1 %v3893_v54 }
 0x19e   :  { %v1140_v52 = vpop.permute.xlu1 %1139 }
 0x1a1   :  { %v1142_v2 = vpop.permute.xlu0 %1141 }
 0x1a2   :  { %v1152_v57 = vsel %vm174_vm4, %v1140_v52, %v1142_v2 }
 0x1a3   :  { %v1157_v43 = vadd.f32 %v1152_v57, %v3476_v24 }
 0x1a5   :  { %v1172_v63 = vpop.permute.xlu1 %1171 }
 0x1a8   :  { %v1170_v50 = vpop.permute.xlu0 %1169 }
 0x1a9   :  { %v1182_v7 = vsel %vm193_vm5, %v1170_v50, %v1172_v63 }
 0x1ac   :  { %v1168_v41 = vpop.permute.xlu1 %1167 }
 0x1af   :  { %v1138_v15 = vpop.permute.xlu0 %1137 }
 0x1b0   :  { %v1153_v47 = vsel %vm174_vm4, %v1138_v15, %v1140_v52 }
 0x1b1   :  { %v1156_v28 = vadd.f32 %v1153_v47, %v3494_v55  ;;  %v1183_v55 = vsel %vm193_vm5, %v1168_v41, %v1170_v50  ;;  %v1344_v47 = vld [vmem:[#allocation12 + $0x2f0] sm:$0xff] }
 0x1b3   :  { %v1186_v29 = vadd.f32 %v1182_v7, %v1156_v28  ;;  %v1343_v28 = vld [vmem:[#allocation12 + $0x2e8] sm:$0xff] }
 0x1b4   :  { %v1327_v7 = vld [vmem:[#allocation12 + $0x268] sm:$0xff] }
 0x1b5   :  { %v1144_v1 = vpop.permute.xlu1 %1143  ;;  %v1194_v44 = vadd.f32 %v1192_v32, %v1186_v29  ;;  %v1342_v29 = vld [vmem:[#allocation12 + $0x2e0] sm:$0xff] }
 0x1b6   :  { %v1151_v8 = vsel %vm174_vm4, %v1142_v2, %v1144_v1 }
 0x1b7   :  { %v1200_v59 = vmul.f32 0.01, %v1194_v44  ;;  %v1158_v38 = vadd.f32 %v1151_v8, %v3510_v31  ;;  %v1323_v8 = vld [vmem:[#allocation12 + $0x248] sm:$0xff] }
 0x1b9   :  { %v1206_v62 = vmax.f32 %v1194_v44, %v1200_v59  ;;  %v1321_v59 = vld [vmem:[#allocation12 + $0x238] sm:$0xff] }
 0x1bb   :  { %v1148_v40 = vpop.permute.xlu0 %1147 }
 0x1bc   :  { %v1154_v12 = vsel %vm174_vm4, %v1148_v40, %v1138_v15 }
 0x1bd   :  { %v1155_v34 = vadd.f32 %v1154_v12, %v3516_v45  ;;  %v1340_v12 = vld [vmem:[#allocation12 + $0x2d0] sm:$0xff] }
 0x1be   :  { %v1176_v21 = vpop.permute.xlu1 %1175 }
 0x1bf   :  { %v1185_v36 = vadd.f32 %v1183_v55, %v1155_v34  ;;  %v1324_v34 = vld [vmem:[#allocation12 + $0x250] sm:$0xff]  ;;  %v1339_v55 = vld [vmem:[#allocation12 + $0x2c8] sm:$0xff] }
 0x1c1   :  { %v1193_v11 = vadd.f32 %v1192_v32, %v1185_v36  ;;  %v1174_v56 = vpop.permute.xlu0 %1173  ;;  %v1338_v36 = vld [vmem:[#allocation12 + $0x2c0] sm:$0xff] }
 0x1c2   :  { %v1180_v45 = vsel %vm193_vm5, %v1174_v56, %v1176_v21  ;;  %v1181_v35 = vsel %vm193_vm5, %v1172_v63, %v1174_v56  ;;  %v1329_v63 = vld [vmem:[#allocation12 + $0x278] sm:$0xff]  ;;  %v1335_v56 = vld [vmem:[#allocation12 + $0x2a8] sm:$0xff] }
 0x1c3   :  { %v1199_v17 = vmul.f32 0.01, %v1193_v11  ;;  %v1187_v58 = vadd.f32 %v1181_v35, %v1157_v43  ;;  %v1188_v6 = vadd.f32 %v1180_v45, %v1158_v38  ;;  %v1337_v43 = vld [vmem:[#allocation12 + $0x2b8] sm:$0xff]  ;;  %v1336_v38 = vld [vmem:[#allocation12 + $0x2b0] sm:$0xff]  ;;  %v1319_v45 = vld [vmem:[#allocation12 + $0x228] sm:$0xff] }
 0x1c4   :  { %v1334_v35 = vld [vmem:[#allocation12 + $0x2a0] sm:$0xff] }
 0x1c5   :  { %v1205_v48 = vmax.f32 %v1193_v11, %v1199_v17  ;;  %v1195_v46 = vadd.f32 %v1192_v32, %v1187_v58  ;;  %v1196_v42 = vadd.f32 %v1192_v32, %v1188_v6  ;;  %v1178_v25 = vpop.permute.xlu1 %1177  ;;  %v1320_v11 = vld [vmem:[#allocation12 + $0x230] sm:$0xff]  ;;  %v1318_v17 = vld [vmem:[#allocation12 + $0x220] sm:$0xff]  ;;  %v1333_v58 = vld [vmem:[#allocation12 + $0x298] sm:$0xff] }
 0x1c6   :  { %v1184_v60 = vsel %vm193_vm5, %v1178_v25, %v1168_v41  ;;  %v1179_v53 = vsel %vm193_vm5, %v1176_v21, %v1178_v25  ;;  %v1328_v41 = vld [vmem:[#allocation12 + $0x270] sm:$0xff]  ;;  %v1322_v21 = vld [vmem:[#allocation12 + $0x240] sm:$0xff]  ;;  %v1317_v6 = vld [vmem:[#allocation12 + $0x218] sm:$0xff] }
 0x1c7   :  { %v1217_v18 = vcombine.low %v1205_v48, %v1206_v62  ;;  %v1201_v24 = vmul.f32 0.01, %v1195_v46  ;;  %v1202_v26 = vmul.f32 0.01, %v1196_v42  ;;  %v1146_v31 = vpop.permute.xlu0 %1145  ;;  %v1332_v62 = vld [vmem:[#allocation12 + $0x290] sm:$0xff]  ;;  %v1612_v25 = vld [vmem:[%s3896_s12 + $0x70] sm:$0xff] }
 0x1c8   :  { %v1149_v61 = vsel %vm174_vm4, %v1146_v31, %v1148_v40  ;;  %v1150_v33 = vsel %vm174_vm4, %v1144_v1, %v1146_v31  ;;  %v1326_v1 = vld [vmem:[#allocation12 + $0x260] sm:$0xff]  ;;  %v1325_v40 = vld [vmem:[#allocation12 + $0x258] sm:$0xff]  ;;  %v1316_v48 = vld [vmem:[#allocation12 + $0x210] sm:$0xff] }
 0x1c9   :  { %v1207_v14 = vmax.f32 %v1195_v46, %v1201_v24  ;;  %v1208_v30 = vmax.f32 %v1196_v42, %v1202_v26  ;;  %v1160_v4 = vadd.f32 %v1149_v61, %v3524_v16  ;;  %v1159_v9 = vadd.f32 %v1150_v33, %v3522_v39  ;;  %v1331_v46 = vld [vmem:[#allocation12 + $0x288] sm:$0xff]  ;;  %v1314_v24 = vld [vmem:[#allocation12 + $0x200] sm:$0xff]  ;;  %v1611_v31 = vld [vmem:[%s3896_s12 + $0x68] sm:$0xff] }
 0x1ca   :  { %v1225_v37 = vrot.slane %v1217_v18, %v3895_v3  ;;  %v1315_v42 = vld [vmem:[#allocation12 + $0x208] sm:$0xff]  ;;  %v1330_v18 = vld [vmem:[#allocation12 + $0x280] sm:$0xff]  ;;  %v1608_v61 = vld [vmem:[%s3896_s12 + $0x50] sm:$0xff] }
 0x1cb   :  { %v1218_v20 = vcombine.low %v1207_v14, %v1208_v30  ;;  %v1190_v23 = vadd.f32 %v1184_v60, %v1160_v4  ;;  %v1189_v19 = vadd.f32 %v1179_v53, %v1159_v9  ;;  %v1613_v26 = vld [vmem:[%s3896_s12 + $0x78] sm:$0xff]  ;;  %v1610_v14 = vld [vmem:[%s3896_s12 + $0x60] sm:$0xff]  ;;  %v1607_v33 = vld [vmem:[%s3896_s12 + $0x48] sm:$0xff] }
 0x1cc   :  { %v1609_v30 = vld [vmem:[%s3896_s12 + $0x58] sm:$0xff]  ;;  %v1606_v4 = vld [vmem:[%s3896_s12 + $0x40] sm:$0xff]  ;;  %v1604_v60 = vld [vmem:[%s3896_s12 + $0x30] sm:$0xff] }
 0x1cd   :  { %v1232_v0 = vrot.slane %v1218_v20, %v3895_v3  ;;  %v1198_v10 = vadd.f32 %v1192_v32, %v1190_v23  ;;  %v1197_v22 = vadd.f32 %v1192_v32, %v1189_v19  ;;  %v1341_v32 = vld [vmem:[#allocation12 + $0x2d8] sm:$0xff]  ;;  %v1605_v20 = vld [vmem:[%s3896_s12 + $0x38] sm:$0xff]  ;;  %v1603_v9 = vld [vmem:[%s3896_s12 + $0x28] sm:$0xff] }
 0x1ce   :  { %v1602_v53 = vld [vmem:[%s3896_s12 + $0x20] sm:$0xff]  ;;  %v1601_v23 = vld [vmem:[%s3896_s12 + $0x18] sm:$0xff] }
 0x1cf   :  { %v1233_v27 = vcombine.low %v1225_v37, %v1232_v0  ;;  %v1204_v49 = vmul.f32 0.01, %v1198_v10  ;;  %v1203_v16 = vmul.f32 0.01, %v1197_v22  ;;  %v1936_v51 = vcombine.low %v1232_v0, %v1232_v0  ;;  %v1599_v37 = vld [vmem:[%s3896_s12 + $0x8] sm:$0xff]  ;;  %v1598_v0 = vld [vmem:[%s3896_s12] sm:$0xff] }
 0x1d1   :  { %v1362_v5 = vrot.slane %v1233_v27, %v3895_v3  ;;  %v1210_v2 = vmax.f32 %v1198_v10, %v1204_v49  ;;  %v1209_v52 = vmax.f32 %v1197_v22, %v1203_v16  ;;  %v1369_v50 = vrot.slane %v1936_v51, %v3895_v3  ;;  %v1600_v3 = vld [vmem:[%s3896_s12 + $0x10] sm:$0xff]  ;;  %v1762_v49 = vld [vmem:[%s3897_s2] ss:$0 sm:$0xff] }
 0x1d3   :  { %v1370_v39 = vcombine.high %v1362_v5, %v1362_v5  ;;  %v1234_v15 = vcombine.low %v1209_v52, %v1210_v2  ;;  %v1371_v13 = vcombine.high %v1369_v50, %v1369_v50 }
 0x1d5   :  { %1450 = vmatprep.mubr.f32.mxu0 %v1370_v39  ;;  %1761 = vst.sshfl [vmem:[#allocation3 + $0x8] sm:$0x33 pattern:$0x76325410] %v1234_v15  ;;  %1520 = vmatprep.mubr.f32.mxu1 %v1371_v13 }
 0x1d6   :  { %1451 = vmatmul.mubr.f32.vlgmr.msra.gmra.mxu0 %v1362_v5  ;;  %1521 = vmatmul.mubr.f32.vlgmr.msra.gmra.mxu1 %v1369_v50 }
 0x1d7   :  { %1836 = vmatpush3.msra.mxu0 %v1329_v63  ;;  %1888 = vmatpush3.msra.mxu1 %v1613_v26 }
 0x1d8   :  { %1837 = vmatprep.subr.mxu0 %v1344_v47  ;;  %1889 = vmatprep.subr.mxu1 %v3893_v54 }
 0x1d9   :  { %1838 = vmatpush3.msra.mxu0 %v1328_v41  ;;  %1890 = vmatpush3.msra.mxu1 %v1612_v25 }
 0x1da   :  { %1839 = vmatprep.subr.mxu0 %v1343_v28  ;;  %1891 = vmatprep.subr.mxu1 %v3893_v54 }
 0x1db   :  { %1840 = vmatpush3.msra.mxu0 %v1327_v7  ;;  %1892 = vmatpush3.msra.mxu1 %v1611_v31 }
 0x1dc   :  { %1841 = vmatprep.subr.mxu0 %v1342_v29  ;;  %v1763_v44 = vld.sshfl [vmem:[#allocation3 + $0x8] sm:$0x33 pattern:$0x76325410]  ;;  %1893 = vmatprep.subr.mxu1 %v3893_v54 }
 0x1dd   :  { %1842 = vmatpush3.msra.mxu0 %v1326_v1  ;;  %v1379_v57 = vcombine.high %v1763_v44, %v1763_v44  ;;  %1894 = vmatpush3.msra.mxu1 %v1610_v14 }
 0x1de   :  { %1843 = vmatprep.subr.mxu0 %v1341_v32  ;;  %1895 = vmatprep.subr.mxu1 %v3893_v54 }
 0x1df   :  { %1844 = vmatpush3.msra.mxu0 %v1325_v40  ;;  %1590 = vmatprep.mubr.f32.mxu0 %v1379_v57 }
 0x1e0   :  { %1845 = vmatprep.subr.mxu0 %v1340_v12  ;;  %1896 = vmatpush3.msra.mxu1 %v1609_v30 }
 0x1e1   :  { %1846 = vmatpush3.msra.mxu0 %v1324_v34  ;;  %1897 = vmatprep.subr.mxu1 %v3893_v54 }
 0x1e2   :  { %1847 = vmatprep.subr.mxu0 %v1339_v55  ;;  %1898 = vmatpush3.msra.mxu1 %v1608_v61 }
 0x1e3   :  { %1848 = vmatpush3.msra.mxu0 %v1323_v8  ;;  %1899 = vmatprep.subr.mxu1 %v3893_v54 }
 0x1e4   :  { %1849 = vmatprep.subr.mxu0 %v1338_v36  ;;  %1900 = vmatpush3.msra.mxu1 %v1607_v33 }
 0x1e5   :  { %1850 = vmatpush3.msra.mxu0 %v1322_v21  ;;  %1901 = vmatprep.subr.mxu1 %v3893_v54 }
 0x1e6   :  { %1851 = vmatprep.subr.mxu0 %v1337_v43  ;;  %1902 = vmatpush3.msra.mxu1 %v1606_v4 }
 0x1e7   :  { %1852 = vmatpush3.msra.mxu0 %v1321_v59  ;;  %1903 = vmatprep.subr.mxu1 %v3893_v54 }
 0x1e8   :  { %1853 = vmatprep.subr.mxu0 %v1336_v38  ;;  %1904 = vmatpush3.msra.mxu1 %v1605_v20 }
 0x1e9   :  { %1854 = vmatpush3.msra.mxu0 %v1320_v11  ;;  %1905 = vmatprep.subr.mxu1 %v3893_v54 }
 0x1ea   :  { %1855 = vmatprep.subr.mxu0 %v1335_v56  ;;  %1906 = vmatpush3.msra.mxu1 %v1604_v60 }
 0x1eb   :  { %1856 = vmatpush3.msra.mxu0 %v1319_v45  ;;  %1907 = vmatprep.subr.mxu1 %v3893_v54 }
 0x1ec   :  { %1857 = vmatprep.subr.mxu0 %v1334_v35  ;;  %1908 = vmatpush3.msra.mxu1 %v1603_v9 }
 0x1ed   :  { %1858 = vmatpush3.msra.mxu0 %v1318_v17  ;;  %1909 = vmatprep.subr.mxu1 %v3893_v54 }
 0x1ee   :  { %1859 = vmatprep.subr.mxu0 %v1333_v58  ;;  %1910 = vmatpush3.msra.mxu1 %v1602_v53 }
 0x1ef   :  { %1860 = vmatpush3.msra.mxu0 %v1317_v6  ;;  %1919 = vmatprep.mubr.msk.f32.mxu1 %vm2033_vm8, %v3893_v54 }
 0x1f0   :  { %1861 = vmatprep.subr.mxu0 %v1332_v62  ;;  %1911 = vmatprep.subr.mxu1 %v3893_v54 }
 0x1f1   :  { %1862 = vmatpush3.msra.mxu0 %v1316_v48  ;;  %1912 = vmatpush3.msra.mxu1 %v1601_v23 }
 0x1f2   :  { %1863 = vmatprep.subr.mxu0 %v1331_v46  ;;  %1913 = vmatprep.subr.mxu1 %v3893_v54 }
 0x1f3   :  { %1864 = vmatpush3.msra.mxu0 %v1315_v42  ;;  %1914 = vmatpush3.msra.mxu1 %v1600_v3 }
 0x1f4   :  { %1865 = vmatprep.subr.mxu0 %v1330_v18  ;;  %1915 = vmatprep.subr.mxu1 %v3893_v54 }
 0x1f5   :  { %1866 = vmatpush3.msra.mxu0 %v1314_v24  ;;  %1916 = vmatpush3.msra.mxu1 %v1599_v37 }
 0x1f6   :  { %1591 = vmatmul.mubr.f32.vlgmr.msra.gmra.mxu0 %v1763_v44  ;;  %1917 = vmatprep.subr.mxu1 %v3893_v54  ;;  %v1764_v54 = vld [vmem:[%s3898_s14] ss:$0 sm:$0xff] }
 0x1f7   :  { %1918 = vmatpush3.msra.mxu1 %v1598_v0 }
 0x296   :  { %v1797_v19 = vpop.f32.mrf.mxu0  ;;  %v1832_v27 = vpop.f32.mrf.mxu1 }
 0x298   :  { %v1798_v10 = vpop.f32.mrf.mxu0  ;;  %v1833_v16 = vpop.f32.mrf.mxu1 }
 0x299   :  { %v1799_v22 = vadd.f32 %v1798_v10, %v1797_v19  ;;  %v1834_v51 = vadd.f32 %v1833_v16, %v1832_v27 }
 0x29b   :  { %v1453_v5 = vadd.f32 %v1799_v22, %v1762_v49 }
 0x29d   :  { %v1523_v39 = vadd.f32 %v1834_v51, %v1453_v5 }
 0x2b6   :  { %v1867_v2 = vpop.f32.mrf.mxu0 }
 0x2b8   :  { %v1868_v52 = vpop.f32.mrf.mxu0 }
 0x2b9   :  { %v1869_v50 = vadd.f32 %v1868_v52, %v1867_v2 }
 0x2bb   :  { %v1593_v63 = vadd.f32 %v1869_v50, %v1523_v39 }
 0x2bd   :  { %v1596_v15 = vmul.f32 0.01, %v1593_v63 }
 0x2bf   :  { %v1597_v13 = vmax.f32 %v1593_v63, %v1596_v15 }
 0x2c1   :  { %1920 = vmatmul.mubr.f32.vlgmr.msra.gmra.mxu1 %v1597_v13 }
 0x381   :  { %v1687_v47 = vpop.f32.mrf.mxu1 }
 0x382   :  { %v1688_v41 = vadd.f32 %v1764_v54, %v1687_v47 }
 0x383   :  { %v1921_v28 = vpop.f32.mrf.mxu1 }
 0x384   :  { %1692 = vst.msk [vmem:[#allocation13] sm:$0x3] %vm1691_vm9, %v1688_v41 }
 0x385   :  { %2004 = shalt.err (!%p2001_p10)
}
 0x386   :  { %s3899_s18 = sld [smem:[#allocation75_spill]] }
 0x38c   :  { %1702 = dma.vmem_to_hbm [thread:$0]  %s1700_s16, 32, %s3899_s18, [#allocation7]  }
 0x38d   :  { %2019 = dma.done.wait [#allocation7], 32  }
 0x38e   :  { %2020 = vsyncadd [#allocation7], 4294967264 }
 0x38f   :  { %1706 = vsyncpa [#allocation6], 1 }
 0x390   :  { %1707 = vsyncpa [#allocation7], 1 }
 0x391   :  { %1708 = vsyncpa [#allocation8], 1 }
 0x392   :  { %1709 = vsyncpa [#allocation10], 1 }

</bundles_post_ra>
